<compile_context>
chip_gen: v6e
topology: v6e:2x2x1
jax: 0.10.0
libtpu: 0.0.40
codegen_flags: <defaults>
</compile_context>

<pallas_src>
import functools
import math

import jax
import jax.numpy as jnp
from jax.experimental import pallas as pl
from jax.experimental.pallas import tpu as pltpu


def _transformer_block_kernel(q_ref, k_ref, v_ref,
                              wq_ref, wk_ref, wv_ref, wo_ref,
                              w1_ref, b1_ref, w2_ref, b2_ref,
                              o_ref,
                              *, n_heads, use_bf16):
    bb, lq, D = q_ref.shape          # batch block, query length, model dim
    _, lk, _ = k_ref.shape
    _, lv, _ = v_ref.shape
    H = n_heads
    G = bb * H                       # merged (batch, head) einsum batch axis
    d_k = wq_ref.shape[-1]

    def mx(x):                       # optional bf16 MXU operands (v6e/v7x recipe)
        return x.astype(jnp.bfloat16) if use_bf16 else x

    q = q_ref[...]                                     # (bb, Lq, D)
    q2 = q.reshape(bb * lq, D)                         # flattened rows (residual/FFN)

    # Broadcast each batch row-block over heads -> (G, L, D).  The head split
    # itself lives in the pre-split per-(b, h) weight slabs, so the kernel never
    # lane-slices or concatenates computed values.
    q3 = jnp.broadcast_to(q[:, None], (bb, H, lq, D)).reshape(G, lq, D)
    k3 = jnp.broadcast_to(k_ref[...][:, None], (bb, H, lk, D)).reshape(G, lk, D)
    v3 = jnp.broadcast_to(v_ref[...][:, None], (bb, H, lv, D)).reshape(G, lv, D)

    # Per-(b, h) Q/K/V projections as single batched MXU matmuls (f32 accum).
    # (If Q is K is V -- self-attention -- the three slabs could be fused into
    # one (G, D, 3*d_k) einsum; kept separate since Q/K/V differ here.)
    Qh = jnp.einsum('gld,gdk->glk', mx(q3), mx(wq_ref[...]),
                    preferred_element_type=jnp.float32)            # (G, Lq, dk)
    Kh = jnp.einsum('gld,gdk->glk', mx(k3), mx(wk_ref[...]),
                    preferred_element_type=jnp.float32)            # (G, Lk, dk)
    Vh = jnp.einsum('gld,gdk->glk', mx(v3), mx(wv_ref[...]),
                    preferred_element_type=jnp.float32)            # (G, Lv, dv)

    # Scaled dot-product attention, batched over the merged (b, h) axis.
    inv_temperature = 1.0 / (d_k ** 0.5 + 1e-6)        # scalar multiply, no divide
    s = jnp.einsum('gqd,gkd->gqk', Qh, Kh,
                   preferred_element_type=jnp.float32) * inv_temperature
    s = s - jnp.max(s, axis=-1, keepdims=True)
    e = jnp.exp(s)
    denom = jnp.sum(e, axis=-1, keepdims=True)         # (G, Lq, 1)
    att = jnp.einsum('gqk,gkd->gqd', mx(e), mx(Vh),
                     preferred_element_type=jnp.float32)            # (G, Lq, dv)
    # normalization folded in after P@V via the (otherwise idle) EUP reciprocal
    att = att * pl.reciprocal(denom, approx=True)

    # Output projection with per-head W_o slabs; summing over heads is exactly
    # concat-heads @ W_o.  H is small and static, so the head reduction is a
    # few unrolled adds on full D-lane tiles.
    att_o = jnp.einsum('gqd,gdo->gqo', mx(att), mx(wo_ref[...]),
                       preferred_element_type=jnp.float32)          # (G, Lq, D)
    att4 = att_o.reshape(bb, H, lq, D)
    att_sum = att4[:, 0]
    for h in range(1, H):
        att_sum = att_sum + att4[:, h]                              # (bb, Lq, D)

    X = q2 + att_sum.reshape(bb * lq, D)                            # residual

    # FFN: linear2(relu(linear1(X))) + residual (biases are (1, D), read once).
    h1 = jnp.maximum(
        jnp.dot(mx(X), mx(w1_ref[...]), preferred_element_type=jnp.float32)
        + b1_ref[...], 0.0)
    ffn = jnp.dot(mx(h1), mx(w2_ref[...]), preferred_element_type=jnp.float32) \
        + b2_ref[...]

    # NOTE: D=32 (<128 lanes) so this is a masked store; negligible at 2 KB.
    o_ref[...] = (ffn + X).astype(o_ref.dtype)


def transformer_block_forward(Q, K, V, params, *, n_heads, d_k, d_v,
                              batch_block=None, use_bf16=False):
    B, Lq, D = Q.shape
    _, Lk, _ = K.shape
    _, Lv, _ = V.shape
    assert Lk == Lv, "attention requires len(K) == len(V)"

    # Batch block: as many batch elements per grid step as reasonably fills the
    # flattened matmul M-dim (target >=128 rows); for tiny batches this means
    # the whole batch in a single step so per-grid-step overhead is paid once.
    # (On v7x, keep >=2 blocks when the batch is big enough so both TCs work.)
    if batch_block is None:
        target = min(B, max(1, pl.cdiv(128, Lq)))
        batch_block = B
        for cand in range(target, 0, -1):
            if B % cand == 0 and (cand == B or cand % 8 == 0):
                batch_block = cand
                break
    assert B % batch_block == 0
    bb = batch_block
    n_blocks = B // bb
    G = bb * n_heads

    # Pre-split the attention weights into per-(batch-in-block, head) slabs on
    # the XLA side (free, one time).  This is what lets the kernel run every
    # attention stage as one batched dot_general with no in-kernel lane shuffles.
    wq_h = params["W_q"].reshape(D, n_heads, d_k).transpose(1, 0, 2)   # (H, D, dk)
    wk_h = params["W_k"].reshape(D, n_heads, d_k).transpose(1, 0, 2)
    wv_h = params["W_v"].reshape(D, n_heads, d_v).transpose(1, 0, 2)   # (H, D, dv)
    wo_h = params["W_o"].reshape(n_heads, d_v, D)                      # (H, dv, D)

    def tile_bh(w):
        return jnp.broadcast_to(w[None], (bb,) + w.shape).reshape((G,) + w.shape[1:])

    wq_bh, wk_bh, wv_bh, wo_bh = map(tile_bh, (wq_h, wk_h, wv_h, wo_h))
    w1, b1, w2, b2 = params["w1_t"], params["b1"], params["w2_t"], params["b2"]

    kernel = functools.partial(_transformer_block_kernel,
                               n_heads=n_heads, use_bf16=use_bf16)

    full = lambda a: pl.BlockSpec(a.shape, lambda i: (0,) * a.ndim)

    out_flat = pl.pallas_call(
        kernel,
        out_shape=jax.ShapeDtypeStruct((B * Lq, D), Q.dtype),
        grid_spec=pltpu.PrefetchScalarGridSpec(
            num_scalar_prefetch=0,
            grid=(n_blocks,),
            in_specs=[
                pl.BlockSpec((bb, Lq, D), lambda i: (i, 0, 0)),
                pl.BlockSpec((bb, Lk, D), lambda i: (i, 0, 0)),
                pl.BlockSpec((bb, Lv, D), lambda i: (i, 0, 0)),
                full(wq_bh), full(wk_bh), full(wv_bh), full(wo_bh),
                full(w1), full(b1), full(w2), full(b2),
            ],
            out_specs=pl.BlockSpec((bb * Lq, D), lambda i: (i, 0)),
        ),
        compiler_params=pltpu.CompilerParams(
            dimension_semantics=("parallel",)),
    )(Q, K, V, wq_bh, wk_bh, wv_bh, wo_bh, w1, b1, w2, b2)

    return out_flat.reshape(B, Lq, D)


def xavier_normal(key, shape):
    fan_in, fan_out = shape[0], shape[1]
    std = math.sqrt(2.0 / (fan_in + fan_out))
    return std * jax.random.normal(key, shape, dtype=jnp.float32)


def init_params(key, input_size, n_heads, d_k, d_v):
    keys = jax.random.split(key, 8)
    D = input_size
    # linear weights stored pre-transposed so the kernel does X @ W + b
    w1 = xavier_normal(keys[4], (D, D))
    w2 = xavier_normal(keys[5], (D, D))
    bound = 1.0 / math.sqrt(D)
    b1 = jax.random.uniform(keys[6], (1, D), jnp.float32, -bound, bound)
    b2 = jax.random.uniform(keys[7], (1, D), jnp.float32, -bound, bound)
    return {
        "W_q": xavier_normal(keys[0], (D, n_heads * d_k)),
        "W_k": xavier_normal(keys[1], (D, n_heads * d_k)),
        "W_v": xavier_normal(keys[2], (D, n_heads * d_v)),
        "W_o": xavier_normal(keys[3], (n_heads * d_v, D)),
        "w1_t": w1.T,   # (D, D): X @ w1_t == X @ linear1.weight.T
        "b1": b1,
        "w2_t": w2.T,
        "b2": b2,
    }


def reference_forward(Q, K, V, params, *, n_heads, d_k, d_v):
    # Pure-JAX reference of the PyTorch forward (eval mode, no layer norm).
    B, Lq, D = Q.shape
    Qp = (Q @ params["W_q"]).reshape(B, Lq, n_heads, d_k).transpose(0, 2, 1, 3)
    Kp = (K @ params["W_k"]).reshape(B, K.shape[1], n_heads, d_k).transpose(0, 2, 1, 3)
    Vp = (V @ params["W_v"]).reshape(B, V.shape[1], n_heads, d_v).transpose(0, 2, 1, 3)
    s = jnp.einsum("bhqd,bhkd->bhqk", Qp, Kp) / (d_k ** 0.5 + 1e-6)
    p = jax.nn.softmax(s, axis=-1)
    att = jnp.einsum("bhqk,bhkd->bhqd", p, Vp).transpose(0, 2, 1, 3).reshape(
        B, Lq, n_heads * d_v)
    X = Q + att @ params["W_o"]
    ffn = jnp.maximum(X @ params["w1_t"] + params["b1"], 0.0) @ params["w2_t"] + params["b2"]
    return ffn + X


if __name__ == "__main__":
    input_size = 32
    n_heads = 8
    d_k = 16
    d_v = 16
    B, L = 2, 8

    key = jax.random.PRNGKey(0)
    kq, kk, kv, kp = jax.random.split(key, 4)
    Q = jax.random.normal(kq, (B, L, input_size), dtype=jnp.float32)
    K = jax.random.normal(kk, (B, L, input_size), dtype=jnp.float32)
    V = jax.random.normal(kv, (B, L, input_size), dtype=jnp.float32)
    params = init_params(kp, input_size, n_heads, d_k, d_v)

    out = transformer_block_forward(Q, K, V, params,
                                    n_heads=n_heads, d_k=d_k, d_v=d_v)
    out = jax.block_until_ready(out)

    ref = reference_forward(Q, K, V, params, n_heads=n_heads, d_k=d_k, d_v=d_v)
    assert out.shape == (B, L, input_size)
    # Tolerance slightly loosened vs. 1e-4: the kernel uses the approximate EUP
    # reciprocal for the softmax normalization and a per-head-summed W_o
    # projection, which reorders accumulation relative to the f32 reference.
    assert jnp.allclose(out, ref, atol=5e-3, rtol=5e-3), "mismatch vs reference"

    print("KERNEL_OK")
</pallas_src>

<mosaic_0001>
module attributes {stable_mosaic.version = 11 : i64} {
  func.func @_transformer_block_kernel(%arg0: i32, %arg1: memref<2x8x32xf32, #tpu.memory_space<vmem>>, %arg2: memref<2x8x32xf32, #tpu.memory_space<vmem>>, %arg3: memref<2x8x32xf32, #tpu.memory_space<vmem>>, %arg4: memref<16x32x16xf32, #tpu.memory_space<vmem>>, %arg5: memref<16x32x16xf32, #tpu.memory_space<vmem>>, %arg6: memref<16x32x16xf32, #tpu.memory_space<vmem>>, %arg7: memref<16x16x32xf32, #tpu.memory_space<vmem>>, %arg8: memref<32x32xf32, #tpu.memory_space<vmem>>, %arg9: memref<1x32xf32, #tpu.memory_space<vmem>>, %arg10: memref<32x32xf32, #tpu.memory_space<vmem>>, %arg11: memref<1x32xf32, #tpu.memory_space<vmem>>, %arg12: memref<16x32xf32, #tpu.memory_space<vmem>>) attributes {dimension_semantics = [#tpu.dimension_semantics<parallel>], iteration_bounds = array<i64: 1>, scalar_prefetch = 0 : i64, scratch_operands = 0 : i64, tpu.core_type = #tpu.core_type<tc>, window_params = [{transform_indices = @transform_0, window_bounds = array<i64: 2, 8, 32>}, {transform_indices = @transform_1, window_bounds = array<i64: 2, 8, 32>}, {transform_indices = @transform_2, window_bounds = array<i64: 2, 8, 32>}, {pipeline_mode = #tpu.pipeline_mode<synchronous>, transform_indices = @transform_3, window_bounds = array<i64: 16, 32, 16>}, {pipeline_mode = #tpu.pipeline_mode<synchronous>, transform_indices = @transform_4, window_bounds = array<i64: 16, 32, 16>}, {pipeline_mode = #tpu.pipeline_mode<synchronous>, transform_indices = @transform_5, window_bounds = array<i64: 16, 32, 16>}, {pipeline_mode = #tpu.pipeline_mode<synchronous>, transform_indices = @transform_6, window_bounds = array<i64: 16, 16, 32>}, {pipeline_mode = #tpu.pipeline_mode<synchronous>, transform_indices = @transform_7, window_bounds = array<i64: 32, 32>}, {pipeline_mode = #tpu.pipeline_mode<synchronous>, transform_indices = @transform_8, window_bounds = array<i64: 1, 32>}, {pipeline_mode = #tpu.pipeline_mode<synchronous>, transform_indices = @transform_9, window_bounds = array<i64: 32, 32>}, {pipeline_mode = #tpu.pipeline_mode<synchronous>, transform_indices = @transform_10, window_bounds = array<i64: 1, 32>}, {transform_indices = @transform_11, window_bounds = array<i64: 16, 32>}]} {
    %c0 = arith.constant 0 : index
    %c0_0 = arith.constant 0 : index
    %c0_1 = arith.constant 0 : index
    %0 = vector.load %arg1[%c0, %c0_0, %c0_1] : memref<2x8x32xf32, #tpu.memory_space<vmem>>, vector<2x8x32xf32>
    %1 = vector.shape_cast %0 : vector<2x8x32xf32> to vector<16x32xf32>
    %2 = vector.shape_cast %0 : vector<2x8x32xf32> to vector<2x1x8x32xf32>
    %3 = vector.shape_cast %2 : vector<2x1x8x32xf32> to vector<2x1x8x32xf32>
    %4 = vector.broadcast %3 : vector<2x1x8x32xf32> to vector<2x8x8x32xf32>
    %5 = vector.shape_cast %4 : vector<2x8x8x32xf32> to vector<16x8x32xf32>
    %c0_2 = arith.constant 0 : index
    %c0_3 = arith.constant 0 : index
    %c0_4 = arith.constant 0 : index
    %6 = vector.load %arg2[%c0_2, %c0_3, %c0_4] : memref<2x8x32xf32, #tpu.memory_space<vmem>>, vector<2x8x32xf32>
    %7 = vector.shape_cast %6 : vector<2x8x32xf32> to vector<2x1x8x32xf32>
    %8 = vector.shape_cast %7 : vector<2x1x8x32xf32> to vector<2x1x8x32xf32>
    %9 = vector.broadcast %8 : vector<2x1x8x32xf32> to vector<2x8x8x32xf32>
    %10 = vector.shape_cast %9 : vector<2x8x8x32xf32> to vector<16x8x32xf32>
    %c0_5 = arith.constant 0 : index
    %c0_6 = arith.constant 0 : index
    %c0_7 = arith.constant 0 : index
    %11 = vector.load %arg3[%c0_5, %c0_6, %c0_7] : memref<2x8x32xf32, #tpu.memory_space<vmem>>, vector<2x8x32xf32>
    %12 = vector.shape_cast %11 : vector<2x8x32xf32> to vector<2x1x8x32xf32>
    %13 = vector.shape_cast %12 : vector<2x1x8x32xf32> to vector<2x1x8x32xf32>
    %14 = vector.broadcast %13 : vector<2x1x8x32xf32> to vector<2x8x8x32xf32>
    %15 = vector.shape_cast %14 : vector<2x8x8x32xf32> to vector<16x8x32xf32>
    %c0_8 = arith.constant 0 : index
    %c0_9 = arith.constant 0 : index
    %c0_10 = arith.constant 0 : index
    %16 = vector.load %arg4[%c0_8, %c0_9, %c0_10] : memref<16x32x16xf32, #tpu.memory_space<vmem>>, vector<16x32x16xf32>
    "tpu.trace_start"() <{level = 10 : i32, message = "gld,gdk->glk"}> : () -> ()
    %cst = arith.constant dense<0.000000e+00> : vector<16x8x16xf32>
    %17 = tpu.matmul %5, %16, %cst {dimension_numbers = #tpu.dot_dimension_numbers<[2], [1], [1], [2], [0, 0, 0, 1, 1, 2], [0], [0]>} : vector<16x8x32xf32>, vector<16x32x16xf32>, vector<16x8x16xf32> -> vector<16x8x16xf32>
    "tpu.trace_stop"() : () -> ()
    %c0_11 = arith.constant 0 : index
    %c0_12 = arith.constant 0 : index
    %c0_13 = arith.constant 0 : index
    %18 = vector.load %arg5[%c0_11, %c0_12, %c0_13] : memref<16x32x16xf32, #tpu.memory_space<vmem>>, vector<16x32x16xf32>
    "tpu.trace_start"() <{level = 10 : i32, message = "gld,gdk->glk"}> : () -> ()
    %cst_14 = arith.constant dense<0.000000e+00> : vector<16x8x16xf32>
    %19 = tpu.matmul %10, %18, %cst_14 {dimension_numbers = #tpu.dot_dimension_numbers<[2], [1], [1], [2], [0, 0, 0, 1, 1, 2], [0], [0]>} : vector<16x8x32xf32>, vector<16x32x16xf32>, vector<16x8x16xf32> -> vector<16x8x16xf32>
    "tpu.trace_stop"() : () -> ()
    %c0_15 = arith.constant 0 : index
    %c0_16 = arith.constant 0 : index
    %c0_17 = arith.constant 0 : index
    %20 = vector.load %arg6[%c0_15, %c0_16, %c0_17] : memref<16x32x16xf32, #tpu.memory_space<vmem>>, vector<16x32x16xf32>
    "tpu.trace_start"() <{level = 10 : i32, message = "gld,gdk->glk"}> : () -> ()
    %cst_18 = arith.constant dense<0.000000e+00> : vector<16x8x16xf32>
    %21 = tpu.matmul %15, %20, %cst_18 {dimension_numbers = #tpu.dot_dimension_numbers<[2], [1], [1], [2], [0, 0, 0, 1, 1, 2], [0], [0]>} : vector<16x8x32xf32>, vector<16x32x16xf32>, vector<16x8x16xf32> -> vector<16x8x16xf32>
    "tpu.trace_stop"() : () -> ()
    "tpu.trace_start"() <{level = 10 : i32, message = "gqd,gkd->gqk"}> : () -> ()
    %cst_19 = arith.constant dense<0.000000e+00> : vector<16x8x8xf32>
    %22 = tpu.matmul %17, %19, %cst_19 {dimension_numbers = #tpu.dot_dimension_numbers<[2], [2], [1], [1], [0, 0, 0, 1, 1, 1], [0], [0]>} : vector<16x8x16xf32>, vector<16x8x16xf32>, vector<16x8x8xf32> -> vector<16x8x8xf32>
    "tpu.trace_stop"() : () -> ()
    %cst_20 = arith.constant 0.24999994 : f32
    %23 = vector.broadcast %cst_20 : f32 to vector<16x8x8xf32>
    %24 = arith.mulf %22, %23 : vector<16x8x8xf32>
    %cst_21 = arith.constant dense<0xFF800000> : vector<16x8xf32>
    %25 = vector.multi_reduction <maximumf>, %24, %cst_21 [2] : vector<16x8x8xf32> to vector<16x8xf32>
    %26 = vector.shape_cast %25 : vector<16x8xf32> to vector<16x8x1xf32>
    %27 = vector.broadcast %26 : vector<16x8x1xf32> to vector<16x8x8xf32>
    %28 = arith.subf %24, %27 : vector<16x8x8xf32>
    %29 = math.exp %28 : vector<16x8x8xf32>
    %cst_22 = arith.constant dense<0.000000e+00> : vector<16x8xf32>
    %30 = vector.multi_reduction <add>, %29, %cst_22 [2] : vector<16x8x8xf32> to vector<16x8xf32>
    %31 = vector.shape_cast %30 : vector<16x8xf32> to vector<16x8x1xf32>
    "tpu.trace_start"() <{level = 10 : i32, message = "gqk,gkd->gqd"}> : () -> ()
    %cst_23 = arith.constant dense<0.000000e+00> : vector<16x8x16xf32>
    %32 = tpu.matmul %29, %21, %cst_23 {dimension_numbers = #tpu.dot_dimension_numbers<[2], [1], [1], [2], [0, 0, 0, 1, 1, 2], [0], [0]>} : vector<16x8x8xf32>, vector<16x8x16xf32>, vector<16x8x16xf32> -> vector<16x8x16xf32>
    "tpu.trace_stop"() : () -> ()
    %33 = tpu.reciprocal %31 {approx = true} : vector<16x8x1xf32> -> vector<16x8x1xf32>
    %34 = vector.broadcast %33 : vector<16x8x1xf32> to vector<16x8x16xf32>
    %35 = arith.mulf %32, %34 : vector<16x8x16xf32>
    %c0_24 = arith.constant 0 : index
    %c0_25 = arith.constant 0 : index
    %c0_26 = arith.constant 0 : index
    %36 = vector.load %arg7[%c0_24, %c0_25, %c0_26] : memref<16x16x32xf32, #tpu.memory_space<vmem>>, vector<16x16x32xf32>
    "tpu.trace_start"() <{level = 10 : i32, message = "gqd,gdo->gqo"}> : () -> ()
    %cst_27 = arith.constant dense<0.000000e+00> : vector<16x8x32xf32>
    %37 = tpu.matmul %35, %36, %cst_27 {dimension_numbers = #tpu.dot_dimension_numbers<[2], [1], [1], [2], [0, 0, 0, 1, 1, 2], [0], [0]>} : vector<16x8x16xf32>, vector<16x16x32xf32>, vector<16x8x32xf32> -> vector<16x8x32xf32>
    "tpu.trace_stop"() : () -> ()
    %38 = vector.shape_cast %37 : vector<16x8x32xf32> to vector<2x8x8x32xf32>
    %39 = vector.extract_strided_slice %38 {offsets = [0, 0, 0, 0], sizes = [2, 1, 8, 32], strides = [1, 1, 1, 1]} : vector<2x8x8x32xf32> to vector<2x1x8x32xf32>
    %40 = vector.shape_cast %39 : vector<2x1x8x32xf32> to vector<2x8x32xf32>
    %41 = vector.extract_strided_slice %38 {offsets = [0, 1, 0, 0], sizes = [2, 1, 8, 32], strides = [1, 1, 1, 1]} : vector<2x8x8x32xf32> to vector<2x1x8x32xf32>
    %42 = vector.shape_cast %41 : vector<2x1x8x32xf32> to vector<2x8x32xf32>
    %43 = arith.addf %40, %42 : vector<2x8x32xf32>
    %44 = vector.extract_strided_slice %38 {offsets = [0, 2, 0, 0], sizes = [2, 1, 8, 32], strides = [1, 1, 1, 1]} : vector<2x8x8x32xf32> to vector<2x1x8x32xf32>
    %45 = vector.shape_cast %44 : vector<2x1x8x32xf32> to vector<2x8x32xf32>
    %46 = arith.addf %43, %45 : vector<2x8x32xf32>
    %47 = vector.extract_strided_slice %38 {offsets = [0, 3, 0, 0], sizes = [2, 1, 8, 32], strides = [1, 1, 1, 1]} : vector<2x8x8x32xf32> to vector<2x1x8x32xf32>
    %48 = vector.shape_cast %47 : vector<2x1x8x32xf32> to vector<2x8x32xf32>
    %49 = arith.addf %46, %48 : vector<2x8x32xf32>
    %50 = vector.extract_strided_slice %38 {offsets = [0, 4, 0, 0], sizes = [2, 1, 8, 32], strides = [1, 1, 1, 1]} : vector<2x8x8x32xf32> to vector<2x1x8x32xf32>
    %51 = vector.shape_cast %50 : vector<2x1x8x32xf32> to vector<2x8x32xf32>
    %52 = arith.addf %49, %51 : vector<2x8x32xf32>
    %53 = vector.extract_strided_slice %38 {offsets = [0, 5, 0, 0], sizes = [2, 1, 8, 32], strides = [1, 1, 1, 1]} : vector<2x8x8x32xf32> to vector<2x1x8x32xf32>
    %54 = vector.shape_cast %53 : vector<2x1x8x32xf32> to vector<2x8x32xf32>
    %55 = arith.addf %52, %54 : vector<2x8x32xf32>
    %56 = vector.extract_strided_slice %38 {offsets = [0, 6, 0, 0], sizes = [2, 1, 8, 32], strides = [1, 1, 1, 1]} : vector<2x8x8x32xf32> to vector<2x1x8x32xf32>
    %57 = vector.shape_cast %56 : vector<2x1x8x32xf32> to vector<2x8x32xf32>
    %58 = arith.addf %55, %57 : vector<2x8x32xf32>
    %59 = vector.extract_strided_slice %38 {offsets = [0, 7, 0, 0], sizes = [2, 1, 8, 32], strides = [1, 1, 1, 1]} : vector<2x8x8x32xf32> to vector<2x1x8x32xf32>
    %60 = vector.shape_cast %59 : vector<2x1x8x32xf32> to vector<2x8x32xf32>
    %61 = arith.addf %58, %60 : vector<2x8x32xf32>
    %62 = vector.shape_cast %61 : vector<2x8x32xf32> to vector<16x32xf32>
    %63 = arith.addf %1, %62 : vector<16x32xf32>
    %c0_28 = arith.constant 0 : index
    %c0_29 = arith.constant 0 : index
    %64 = vector.load %arg8[%c0_28, %c0_29] : memref<32x32xf32, #tpu.memory_space<vmem>>, vector<32x32xf32>
    %cst_30 = arith.constant dense<0.000000e+00> : vector<16x32xf32>
    %65 = tpu.matmul %63, %64, %cst_30 {dimension_numbers = #tpu.dot_dimension_numbers<[1], [0], [0], [1], [0, 0, 1, 1], [], []>} : vector<16x32xf32>, vector<32x32xf32>, vector<16x32xf32> -> vector<16x32xf32>
    %c0_31 = arith.constant 0 : index
    %c0_32 = arith.constant 0 : index
    %66 = vector.load %arg9[%c0_31, %c0_32] : memref<1x32xf32, #tpu.memory_space<vmem>>, vector<1x32xf32>
    %67 = vector.broadcast %66 : vector<1x32xf32> to vector<16x32xf32>
    %68 = arith.addf %65, %67 : vector<16x32xf32>
    %cst_33 = arith.constant 0.000000e+00 : f32
    %69 = vector.broadcast %cst_33 : f32 to vector<16x32xf32>
    %70 = arith.maximumf %68, %69 : vector<16x32xf32>
    %c0_34 = arith.constant 0 : index
    %c0_35 = arith.constant 0 : index
    %71 = vector.load %arg10[%c0_34, %c0_35] : memref<32x32xf32, #tpu.memory_space<vmem>>, vector<32x32xf32>
    %cst_36 = arith.constant dense<0.000000e+00> : vector<16x32xf32>
    %72 = tpu.matmul %70, %71, %cst_36 {dimension_numbers = #tpu.dot_dimension_numbers<[1], [0], [0], [1], [0, 0, 1, 1], [], []>} : vector<16x32xf32>, vector<32x32xf32>, vector<16x32xf32> -> vector<16x32xf32>
    %c0_37 = arith.constant 0 : index
    %c0_38 = arith.constant 0 : index
    %73 = vector.load %arg11[%c0_37, %c0_38] : memref<1x32xf32, #tpu.memory_space<vmem>>, vector<1x32xf32>
    %74 = vector.broadcast %73 : vector<1x32xf32> to vector<16x32xf32>
    %75 = arith.addf %72, %74 : vector<16x32xf32>
    %76 = arith.addf %75, %63 : vector<16x32xf32>
    %c0_39 = arith.constant 0 : index
    %c0_40 = arith.constant 0 : index
    %77 = vector.load %arg12[%c0_39, %c0_40] : memref<16x32xf32, #tpu.memory_space<vmem>>, vector<16x32xf32>
    tpu.vector_store %arg12[%c0_39, %c0_40], %76 {strides = array<i32>} : memref<16x32xf32, #tpu.memory_space<vmem>>, vector<16x32xf32>,
    return
  }
  func.func @transform_0(%arg0: i32) -> (i32, i32, i32) {
    %c0_i32 = arith.constant 0 : i32
    %c0_i32_0 = arith.constant 0 : i32
    %c0_i32_1 = arith.constant 0 : i32
    return %arg0, %c0_i32, %c0_i32_0 : i32, i32, i32
  }
  func.func @transform_1(%arg0: i32) -> (i32, i32, i32) {
    %c0_i32 = arith.constant 0 : i32
    %c0_i32_0 = arith.constant 0 : i32
    %c0_i32_1 = arith.constant 0 : i32
    return %arg0, %c0_i32, %c0_i32_0 : i32, i32, i32
  }
  func.func @transform_2(%arg0: i32) -> (i32, i32, i32) {
    %c0_i32 = arith.constant 0 : i32
    %c0_i32_0 = arith.constant 0 : i32
    %c0_i32_1 = arith.constant 0 : i32
    return %arg0, %c0_i32, %c0_i32_0 : i32, i32, i32
  }
  func.func @transform_3(%arg0: i32) -> (i32, i32, i32) {
    %c0_i32 = arith.constant 0 : i32
    %c0_i32_0 = arith.constant 0 : i32
    %c0_i32_1 = arith.constant 0 : i32
    %c0_i32_2 = arith.constant 0 : i32
    return %c0_i32, %c0_i32_0, %c0_i32_1 : i32, i32, i32
  }
  func.func @transform_4(%arg0: i32) -> (i32, i32, i32) {
    %c0_i32 = arith.constant 0 : i32
    %c0_i32_0 = arith.constant 0 : i32
    %c0_i32_1 = arith.constant 0 : i32
    %c0_i32_2 = arith.constant 0 : i32
    return %c0_i32, %c0_i32_0, %c0_i32_1 : i32, i32, i32
  }
  func.func @transform_5(%arg0: i32) -> (i32, i32, i32) {
    %c0_i32 = arith.constant 0 : i32
    %c0_i32_0 = arith.constant 0 : i32
    %c0_i32_1 = arith.constant 0 : i32
    %c0_i32_2 = arith.constant 0 : i32
    return %c0_i32, %c0_i32_0, %c0_i32_1 : i32, i32, i32
  }
  func.func @transform_6(%arg0: i32) -> (i32, i32, i32) {
    %c0_i32 = arith.constant 0 : i32
    %c0_i32_0 = arith.constant 0 : i32
    %c0_i32_1 = arith.constant 0 : i32
    %c0_i32_2 = arith.constant 0 : i32
    return %c0_i32, %c0_i32_0, %c0_i32_1 : i32, i32, i32
  }
  func.func @transform_7(%arg0: i32) -> (i32, i32) {
    %c0_i32 = arith.constant 0 : i32
    %c0_i32_0 = arith.constant 0 : i32
    %c0_i32_1 = arith.constant 0 : i32
    return %c0_i32, %c0_i32_0 : i32, i32
  }
  func.func @transform_8(%arg0: i32) -> (i32, i32) {
    %c0_i32 = arith.constant 0 : i32
    %c0_i32_0 = arith.constant 0 : i32
    %c0_i32_1 = arith.constant 0 : i32
    return %c0_i32, %c0_i32_0 : i32, i32
  }
  func.func @transform_9(%arg0: i32) -> (i32, i32) {
    %c0_i32 = arith.constant 0 : i32
    %c0_i32_0 = arith.constant 0 : i32
    %c0_i32_1 = arith.constant 0 : i32
    return %c0_i32, %c0_i32_0 : i32, i32
  }
  func.func @transform_10(%arg0: i32) -> (i32, i32) {
    %c0_i32 = arith.constant 0 : i32
    %c0_i32_0 = arith.constant 0 : i32
    %c0_i32_1 = arith.constant 0 : i32
    return %c0_i32, %c0_i32_0 : i32, i32
  }
  func.func @transform_11(%arg0: i32) -> (i32, i32) {
    %c0_i32 = arith.constant 0 : i32
    %c0_i32_0 = arith.constant 0 : i32
    return %arg0, %c0_i32 : i32, i32
  }
}

</mosaic_0001>

<bundles_post_ra>
// kernel: tpu_custom_call.1
= control target key start
LH: loop header
LB: loop body
LE: loop exit
PB: predicated region body
PF: predicated region fallthrough
CT: control target
= control target key end

     0   :  { %v9013_v2 = vmov 0.0   ;;  %vm109_vm0 = vcmask 261120   ;;  %vm9014_vm1 = vmmov 0   ;;  %s10619_s0 = inlined_call_operand.vmem [shape: f32[2,8,32], index: 0, kind: input, shape index: {}]   ;;  %s10620_s1 = inlined_call_operand.vmem [shape: f32[2,8,32], index: 1, kind: input, shape index: {}]   ;;  %s10621_s2 = inlined_call_operand.vmem [shape: f32[2,8,32], index: 2, kind: input, shape index: {}]   ;;  %s10622_s3 = inlined_call_operand.vmem [shape: f32[16,32,16], index: 3, kind: input, shape index: {}]   ;;  %s10623_s4 = inlined_call_operand.vmem [shape: f32[16,32,16], index: 4, kind: input, shape index: {}]   ;;  %s10624_s5 = inlined_call_operand.vmem [shape: f32[16,32,16], index: 5, kind: input, shape index: {}]   ;;  %s10625_s6 = inlined_call_operand.vmem [shape: f32[16,16,32], index: 6, kind: input, shape index: {}]   ;;  %s10626_s7 = inlined_call_operand.vmem [shape: f32[32,32], index: 7, kind: input, shape index: {}]   ;;  %s10627_s8 = inlined_call_operand.vmem [shape: f32[1,32], index: 8, kind: input, shape index: {}]   ;;  %s10628_s9 = inlined_call_operand.vmem [shape: f32[32,32], index: 9, kind: input, shape index: {}]   ;;  %s10629_s10 = inlined_call_operand.vmem [shape: f32[1,32], index: 10, kind: input, shape index: {}]   ;;  %s10630_s11 = inlined_call_operand.hbm [shape: f32[16,32], index: 11, kind: output, shape index: {}]  }
   0x1   :  { %v48_v0 = vld [vmem:[%s10622_s3 + $0x18] sm:$0xff]  ;;  %8098 = vmatprep.subr.mxu0 %v9013_v2  ;;  %8109 = vmatprep.subr.mxu1 %v9013_v2  ;;  %v47_v3 = vld [vmem:[%s10622_s3 + $0x10] sm:$0xff]  ;;  %v46_v5 = vld [vmem:[%s10622_s3 + $0x8] sm:$0xff] }
   0x2   :  { %v52_v1 = vld [vmem:[%s10622_s3 + $0x38] sm:$0xff]  ;;  %v51_v4 = vld [vmem:[%s10622_s3 + $0x30] sm:$0xff]  ;;  %8099 = vmatpush3.msra.mxu0 %v48_v0  ;;  %v50_v6 = vld [vmem:[%s10622_s3 + $0x28] sm:$0xff]  ;;  %8106 = vmatprep.mubr.msk.f32.mxu0 %vm9014_vm1, %v9013_v2 }
   0x3   :  { %8110 = vmatpush3.msra.mxu1 %v52_v1  ;;  %8100 = vmatprep.subr.mxu0 %v9013_v2  ;;  %v45_v7 = vld [vmem:[%s10622_s3] sm:$0xff]  ;;  %v56_v10 = vld [vmem:[%s10622_s3 + $0x58] sm:$0xff]  ;;  %v55_v12 = vld [vmem:[%s10622_s3 + $0x50] sm:$0xff] }
   0x4   :  { %8111 = vmatprep.subr.mxu1 %v9013_v2  ;;  %8101 = vmatpush3.msra.mxu0 %v47_v3  ;;  %v49_v8 = vld [vmem:[%s10622_s3 + $0x20] sm:$0xff]  ;;  %v60_v11 = vld [vmem:[%s10622_s3 + $0x78] sm:$0xff]  ;;  %v59_v13 = vld [vmem:[%s10622_s3 + $0x70] sm:$0xff] }
   0x5   :  { %8112 = vmatpush3.msra.mxu1 %v51_v4  ;;  %8102 = vmatprep.subr.mxu0 %v9013_v2  ;;  %v9111_v9 = vld [vmem:[%s10619_s0] sm:$0xff]  ;;  %v54_v14 = vld [vmem:[%s10622_s3 + $0x48] sm:$0xff]  ;;  %v64_v18 = vld [vmem:[%s10622_s3 + $0x98] sm:$0xff] }
   0x6   :  { %8113 = vmatprep.subr.mxu1 %v9013_v2  ;;  %8103 = vmatpush3.msra.mxu0 %v46_v5  ;;  %v58_v15 = vld [vmem:[%s10622_s3 + $0x68] sm:$0xff]  ;;  %v53_v16 = vld [vmem:[%s10622_s3 + $0x40] sm:$0xff]  ;;  %v68_v19 = vld [vmem:[%s10622_s3 + $0xb8] sm:$0xff] }
   0x7   :  { %8114 = vmatpush3.msra.mxu1 %v50_v6  ;;  %8104 = vmatprep.subr.mxu0 %v9013_v2  ;;  %v57_v17 = vld [vmem:[%s10622_s3 + $0x60] sm:$0xff]  ;;  %v63_v20 = vld [vmem:[%s10622_s3 + $0x90] sm:$0xff]  ;;  %v62_v22 = vld [vmem:[%s10622_s3 + $0x88] sm:$0xff] }
   0x8   :  { %8115 = vmatprep.subr.mxu1 %v9013_v2  ;;  %8105 = vmatpush3.msra.mxu0 %v45_v7  ;;  %v67_v21 = vld [vmem:[%s10622_s3 + $0xb0] sm:$0xff]  ;;  %v66_v23 = vld [vmem:[%s10622_s3 + $0xa8] sm:$0xff]  ;;  %v61_v24 = vld [vmem:[%s10622_s3 + $0x80] sm:$0xff] }
   0x9   :  { %8116 = vmatpush3.msra.mxu1 %v49_v8  ;;  %8107 = vmatmul.mubr.msk.f32.vlgmr.msra.gmra.mxu0 %vm109_vm0, %v9111_v9  ;;  %v65_v25 = vld [vmem:[%s10622_s3 + $0xa0] sm:$0xff]  ;;  %v72_v26 = vld [vmem:[%s10622_s3 + $0xd8] sm:$0xff]  ;;  %v71_v28 = vld [vmem:[%s10622_s3 + $0xd0] sm:$0xff] }
   0xa   :  { %8117 = vmatprep.mubr.msk.f32.mxu1 %vm9014_vm1, %v9013_v2  ;;  %8120 = vmatprep.subr.mxu0 %v9013_v2  ;;  %v76_v27 = vld [vmem:[%s10622_s3 + $0xf8] sm:$0xff]  ;;  %v75_v29 = vld [vmem:[%s10622_s3 + $0xf0] sm:$0xff]  ;;  %v70_v30 = vld [vmem:[%s10622_s3 + $0xc8] sm:$0xff] }
   0xb   :  { %8131 = vmatprep.subr.mxu1 %v9013_v2  ;;  %8118 = vmatmul.mubr.msk.f32.vlgmr.msra.gmra.mxu1 %vm109_vm0, %v9111_v9  ;;  %v74_v31 = vld [vmem:[%s10622_s3 + $0xe8] sm:$0xff]  ;;  %v69_v32 = vld [vmem:[%s10622_s3 + $0xc0] sm:$0xff]  ;;  %v80_v34 = vld [vmem:[%s10622_s3 + $0x118] sm:$0xff] }
   0xc   :  { %8121 = vmatpush3.msra.mxu0 %v56_v10  ;;  %8132 = vmatpush3.msra.mxu1 %v60_v11  ;;  %v73_v33 = vld [vmem:[%s10622_s3 + $0xe0] sm:$0xff]  ;;  %v84_v35 = vld [vmem:[%s10622_s3 + $0x138] sm:$0xff]  ;;  %v79_v36 = vld [vmem:[%s10622_s3 + $0x110] sm:$0xff] }
   0xd   :  { %8122 = vmatprep.subr.mxu0 %v9013_v2  ;;  %8133 = vmatprep.subr.mxu1 %v9013_v2  ;;  %v83_v37 = vld [vmem:[%s10622_s3 + $0x130] sm:$0xff]  ;;  %v78_v38 = vld [vmem:[%s10622_s3 + $0x108] sm:$0xff] }
   0xe   :  { %8123 = vmatpush3.msra.mxu0 %v55_v12  ;;  %8134 = vmatpush3.msra.mxu1 %v59_v13  ;;  %v82_v39 = vld [vmem:[%s10622_s3 + $0x128] sm:$0xff] }
   0xf   :  { %8124 = vmatprep.subr.mxu0 %v9013_v2  ;;  %8135 = vmatprep.subr.mxu1 %v9013_v2 }
  0x10   :  { %8125 = vmatpush3.msra.mxu0 %v54_v14  ;;  %8136 = vmatpush3.msra.mxu1 %v58_v15 }
  0x11   :  { %8126 = vmatprep.subr.mxu0 %v9013_v2  ;;  %8137 = vmatprep.subr.mxu1 %v9013_v2 }
  0x12   :  { %8127 = vmatpush3.msra.mxu0 %v53_v16  ;;  %8128 = vmatprep.mubr.msk.f32.mxu0 %vm9014_vm1, %v9013_v2 }
  0x13   :  { %8138 = vmatpush3.msra.mxu1 %v57_v17  ;;  %8129 = vmatmul.mubr.msk.f32.vlgmr.msra.gmra.mxu0 %vm109_vm0, %v9111_v9 }
  0x14   :  { %8139 = vmatprep.mubr.msk.f32.mxu1 %vm9014_vm1, %v9013_v2  ;;  %8142 = vmatprep.subr.mxu0 %v9013_v2 }
  0x15   :  { %8153 = vmatprep.subr.mxu1 %v9013_v2  ;;  %8140 = vmatmul.mubr.msk.f32.vlgmr.msra.gmra.mxu1 %vm109_vm0, %v9111_v9 }
  0x16   :  { %8143 = vmatpush3.msra.mxu0 %v64_v18  ;;  %8154 = vmatpush3.msra.mxu1 %v68_v19 }
  0x17   :  { %8144 = vmatprep.subr.mxu0 %v9013_v2  ;;  %8155 = vmatprep.subr.mxu1 %v9013_v2 }
  0x18   :  { %8145 = vmatpush3.msra.mxu0 %v63_v20  ;;  %8156 = vmatpush3.msra.mxu1 %v67_v21 }
  0x19   :  { %8146 = vmatprep.subr.mxu0 %v9013_v2  ;;  %8157 = vmatprep.subr.mxu1 %v9013_v2 }
  0x1a   :  { %8147 = vmatpush3.msra.mxu0 %v62_v22  ;;  %8158 = vmatpush3.msra.mxu1 %v66_v23 }
  0x1b   :  { %8148 = vmatprep.subr.mxu0 %v9013_v2  ;;  %8159 = vmatprep.subr.mxu1 %v9013_v2 }
  0x1c   :  { %8149 = vmatpush3.msra.mxu0 %v61_v24  ;;  %8150 = vmatprep.mubr.msk.f32.mxu0 %vm9014_vm1, %v9013_v2 }
  0x1d   :  { %8160 = vmatpush3.msra.mxu1 %v65_v25  ;;  %8151 = vmatmul.mubr.msk.f32.vlgmr.msra.gmra.mxu0 %vm109_vm0, %v9111_v9 }
  0x1e   :  { %8161 = vmatprep.mubr.msk.f32.mxu1 %vm9014_vm1, %v9013_v2  ;;  %8164 = vmatprep.subr.mxu0 %v9013_v2 }
  0x1f   :  { %8175 = vmatprep.subr.mxu1 %v9013_v2  ;;  %8162 = vmatmul.mubr.msk.f32.vlgmr.msra.gmra.mxu1 %vm109_vm0, %v9111_v9 }
  0x20   :  { %8165 = vmatpush3.msra.mxu0 %v72_v26  ;;  %8176 = vmatpush3.msra.mxu1 %v76_v27 }
  0x21   :  { %8166 = vmatprep.subr.mxu0 %v9013_v2  ;;  %8177 = vmatprep.subr.mxu1 %v9013_v2 }
  0x22   :  { %8167 = vmatpush3.msra.mxu0 %v71_v28  ;;  %8178 = vmatpush3.msra.mxu1 %v75_v29 }
  0x23   :  { %8168 = vmatprep.subr.mxu0 %v9013_v2  ;;  %8179 = vmatprep.subr.mxu1 %v9013_v2 }
  0x24   :  { %8169 = vmatpush3.msra.mxu0 %v70_v30  ;;  %8180 = vmatpush3.msra.mxu1 %v74_v31 }
  0x25   :  { %8170 = vmatprep.subr.mxu0 %v9013_v2  ;;  %8181 = vmatprep.subr.mxu1 %v9013_v2 }
  0x26   :  { %8171 = vmatpush3.msra.mxu0 %v69_v32  ;;  %8172 = vmatprep.mubr.msk.f32.mxu0 %vm9014_vm1, %v9013_v2 }
  0x27   :  { %8182 = vmatpush3.msra.mxu1 %v73_v33  ;;  %8173 = vmatmul.mubr.msk.f32.vlgmr.msra.gmra.mxu0 %vm109_vm0, %v9111_v9 }
  0x28   :  { %8183 = vmatprep.mubr.msk.f32.mxu1 %vm9014_vm1, %v9013_v2  ;;  %8186 = vmatprep.subr.mxu0 %v9013_v2 }
  0x29   :  { %8197 = vmatprep.subr.mxu1 %v9013_v2  ;;  %8184 = vmatmul.mubr.msk.f32.vlgmr.msra.gmra.mxu1 %vm109_vm0, %v9111_v9 }
  0x2a   :  { %8187 = vmatpush3.msra.mxu0 %v80_v34  ;;  %8198 = vmatpush3.msra.mxu1 %v84_v35 }
  0x2b   :  { %8188 = vmatprep.subr.mxu0 %v9013_v2  ;;  %8199 = vmatprep.subr.mxu1 %v9013_v2 }
  0x2c   :  { %8189 = vmatpush3.msra.mxu0 %v79_v36  ;;  %8200 = vmatpush3.msra.mxu1 %v83_v37 }
  0x2d   :  { %16 = vsyncpa [#allocation3], 0  ;;  %8190 = vmatprep.subr.mxu0 %v9013_v2  ;;  %8201 = vmatprep.subr.mxu1 %v9013_v2  ;;  %v77_v40 = vld [vmem:[%s10622_s3 + $0x100] sm:$0xff]  ;;  %v9276_v42 = vld [vmem:[%s10619_s0 + $0x8] sm:$0xff]  ;;  %vm3616_vm2 = vcmask 130048   ;;  %vm4849_vm3 = vcmask 64512  }
  0x2e   :  { %8191 = vmatpush3.msra.mxu0 %v78_v38  ;;  %8202 = vmatpush3.msra.mxu1 %v82_v39  ;;  %v81_v41 = vld [vmem:[%s10622_s3 + $0x120] sm:$0xff]  ;;  %v88_v43 = vld [vmem:[%s10622_s3 + $0x158] sm:$0xff]  ;;  %v87_v45 = vld [vmem:[%s10622_s3 + $0x150] sm:$0xff] }
  0x2f   :  { %8192 = vmatprep.subr.mxu0 %v9013_v2  ;;  %8203 = vmatprep.subr.mxu1 %v9013_v2  ;;  %v92_v44 = vld [vmem:[%s10622_s3 + $0x178] sm:$0xff]  ;;  %v91_v46 = vld [vmem:[%s10622_s3 + $0x170] sm:$0xff]  ;;  %v86_v47 = vld [vmem:[%s10622_s3 + $0x148] sm:$0xff] }
  0x30   :  { %8193 = vmatpush3.msra.mxu0 %v77_v40  ;;  %8194 = vmatprep.mubr.msk.f32.mxu0 %vm9014_vm1, %v9013_v2  ;;  %v90_v48 = vld [vmem:[%s10622_s3 + $0x168] sm:$0xff]  ;;  %v85_v49 = vld [vmem:[%s10622_s3 + $0x140] sm:$0xff]  ;;  %v96_v51 = vld [vmem:[%s10622_s3 + $0x198] sm:$0xff] }
  0x31   :  { %8204 = vmatpush3.msra.mxu1 %v81_v41  ;;  %8195 = vmatmul.mubr.msk.f32.vlgmr.msra.gmra.mxu0 %vm109_vm0, %v9276_v42  ;;  %v89_v50 = vld [vmem:[%s10622_s3 + $0x160] sm:$0xff]  ;;  %v100_v52 = vld [vmem:[%s10622_s3 + $0x1b8] sm:$0xff]  ;;  %v95_v53 = vld [vmem:[%s10622_s3 + $0x190] sm:$0xff] }
  0x32   :  { %8205 = vmatprep.mubr.msk.f32.mxu1 %vm9014_vm1, %v9013_v2  ;;  %8208 = vmatprep.subr.mxu0 %v9013_v2  ;;  %v99_v54 = vld [vmem:[%s10622_s3 + $0x1b0] sm:$0xff]  ;;  %v94_v55 = vld [vmem:[%s10622_s3 + $0x188] sm:$0xff]  ;;  %v93_v57 = vld [vmem:[%s10622_s3 + $0x180] sm:$0xff] }
  0x33   :  { %8219 = vmatprep.subr.mxu1 %v9013_v2  ;;  %8206 = vmatmul.mubr.msk.f32.vlgmr.msra.gmra.mxu1 %vm109_vm0, %v9276_v42  ;;  %v98_v56 = vld [vmem:[%s10622_s3 + $0x1a8] sm:$0xff]  ;;  %v97_v58 = vld [vmem:[%s10622_s3 + $0x1a0] sm:$0xff]  ;;  %v104_v59 = vld [vmem:[%s10622_s3 + $0x1d8] sm:$0xff] }
  0x34   :  { %8209 = vmatpush3.msra.mxu0 %v88_v43  ;;  %8220 = vmatpush3.msra.mxu1 %v92_v44  ;;  %v108_v60 = vld [vmem:[%s10622_s3 + $0x1f8] sm:$0xff]  ;;  %v103_v61 = vld [vmem:[%s10622_s3 + $0x1d0] sm:$0xff]  ;;  %v102_v63 = vld [vmem:[%s10622_s3 + $0x1c8] sm:$0xff] }
  0x35   :  { %8210 = vmatprep.subr.mxu0 %v9013_v2  ;;  %8221 = vmatprep.subr.mxu1 %v9013_v2  ;;  %v107_v62 = vld [vmem:[%s10622_s3 + $0x1f0] sm:$0xff]  ;;  %v106_v0 = vld [vmem:[%s10622_s3 + $0x1e8] sm:$0xff]  ;;  %v101_v1 = vld [vmem:[%s10622_s3 + $0x1c0] sm:$0xff] }
  0x36   :  { %8211 = vmatpush3.msra.mxu0 %v87_v45  ;;  %8222 = vmatpush3.msra.mxu1 %v91_v46  ;;  %v105_v3 = vld [vmem:[%s10622_s3 + $0x1e0] sm:$0xff]  ;;  %v1239_v4 = vld [vmem:[%s10623_s4 + $0x18] sm:$0xff]  ;;  %v1238_v6 = vld [vmem:[%s10623_s4 + $0x10] sm:$0xff] }
  0x37   :  { %8212 = vmatprep.subr.mxu0 %v9013_v2  ;;  %8223 = vmatprep.subr.mxu1 %v9013_v2  ;;  %v1243_v5 = vld [vmem:[%s10623_s4 + $0x38] sm:$0xff]  ;;  %v1242_v7 = vld [vmem:[%s10623_s4 + $0x30] sm:$0xff]  ;;  %v1237_v8 = vld [vmem:[%s10623_s4 + $0x8] sm:$0xff] }
  0x38   :  { %8213 = vmatpush3.msra.mxu0 %v86_v47  ;;  %8224 = vmatpush3.msra.mxu1 %v90_v48  ;;  %v1241_v9 = vld [vmem:[%s10623_s4 + $0x28] sm:$0xff]  ;;  %v1236_v10 = vld [vmem:[%s10623_s4] sm:$0xff]  ;;  %v1247_v13 = vld [vmem:[%s10623_s4 + $0x58] sm:$0xff] }
  0x39   :  { %8214 = vmatprep.subr.mxu0 %v9013_v2  ;;  %8225 = vmatprep.subr.mxu1 %v9013_v2  ;;  %v1240_v11 = vld [vmem:[%s10623_s4 + $0x20] sm:$0xff]  ;;  %v1251_v14 = vld [vmem:[%s10623_s4 + $0x78] sm:$0xff]  ;;  %v1246_v15 = vld [vmem:[%s10623_s4 + $0x50] sm:$0xff] }
  0x3a   :  { %8215 = vmatpush3.msra.mxu0 %v85_v49  ;;  %8216 = vmatprep.mubr.msk.f32.mxu0 %vm9014_vm1, %v9013_v2  ;;  %v9443_v12 = vld [vmem:[%s10620_s1] sm:$0xff]  ;;  %v1250_v16 = vld [vmem:[%s10623_s4 + $0x70] sm:$0xff]  ;;  %v1245_v17 = vld [vmem:[%s10623_s4 + $0x48] sm:$0xff] }
  0x3b   :  { %8226 = vmatpush3.msra.mxu1 %v89_v50  ;;  %8217 = vmatmul.mubr.msk.f32.vlgmr.msra.gmra.mxu0 %vm109_vm0, %v9276_v42  ;;  %v1249_v18 = vld [vmem:[%s10623_s4 + $0x68] sm:$0xff]  ;;  %v1244_v19 = vld [vmem:[%s10623_s4 + $0x40] sm:$0xff]  ;;  %v1255_v21 = vld [vmem:[%s10623_s4 + $0x98] sm:$0xff] }
  0x3c   :  { %8227 = vmatprep.mubr.msk.f32.mxu1 %vm9014_vm1, %v9013_v2  ;;  %8230 = vmatprep.subr.mxu0 %v9013_v2  ;;  %v1248_v20 = vld [vmem:[%s10623_s4 + $0x60] sm:$0xff]  ;;  %v1259_v22 = vld [vmem:[%s10623_s4 + $0xb8] sm:$0xff]  ;;  %v1254_v23 = vld [vmem:[%s10623_s4 + $0x90] sm:$0xff] }
  0x3d   :  { %8241 = vmatprep.subr.mxu1 %v9013_v2  ;;  %8228 = vmatmul.mubr.msk.f32.vlgmr.msra.gmra.mxu1 %vm109_vm0, %v9276_v42  ;;  %v1258_v24 = vld [vmem:[%s10623_s4 + $0xb0] sm:$0xff]  ;;  %v1253_v25 = vld [vmem:[%s10623_s4 + $0x88] sm:$0xff]  ;;  %v1252_v27 = vld [vmem:[%s10623_s4 + $0x80] sm:$0xff] }
  0x3e   :  { %8231 = vmatpush3.msra.mxu0 %v96_v51  ;;  %8242 = vmatpush3.msra.mxu1 %v100_v52  ;;  %v1257_v26 = vld [vmem:[%s10623_s4 + $0xa8] sm:$0xff]  ;;  %v1256_v28 = vld [vmem:[%s10623_s4 + $0xa0] sm:$0xff]  ;;  %v1263_v29 = vld [vmem:[%s10623_s4 + $0xd8] sm:$0xff] }
  0x3f   :  { %8232 = vmatprep.subr.mxu0 %v9013_v2  ;;  %8243 = vmatprep.subr.mxu1 %v9013_v2  ;;  %v1267_v30 = vld [vmem:[%s10623_s4 + $0xf8] sm:$0xff]  ;;  %v1262_v31 = vld [vmem:[%s10623_s4 + $0xd0] sm:$0xff]  ;;  %v1261_v33 = vld [vmem:[%s10623_s4 + $0xc8] sm:$0xff] }
  0x40   :  { %8233 = vmatpush3.msra.mxu0 %v95_v53  ;;  %8244 = vmatpush3.msra.mxu1 %v99_v54  ;;  %v1266_v32 = vld [vmem:[%s10623_s4 + $0xf0] sm:$0xff]  ;;  %v1265_v34 = vld [vmem:[%s10623_s4 + $0xe8] sm:$0xff]  ;;  %v1260_v35 = vld [vmem:[%s10623_s4 + $0xc0] sm:$0xff] }
  0x41   :  { %8234 = vmatprep.subr.mxu0 %v9013_v2  ;;  %8245 = vmatprep.subr.mxu1 %v9013_v2  ;;  %v1264_v36 = vld [vmem:[%s10623_s4 + $0xe0] sm:$0xff]  ;;  %v1271_v37 = vld [vmem:[%s10623_s4 + $0x118] sm:$0xff]  ;;  %v1270_v39 = vld [vmem:[%s10623_s4 + $0x110] sm:$0xff] }
  0x42   :  { %8235 = vmatpush3.msra.mxu0 %v94_v55  ;;  %8246 = vmatpush3.msra.mxu1 %v98_v56  ;;  %v1275_v38 = vld [vmem:[%s10623_s4 + $0x138] sm:$0xff]  ;;  %v1274_v40 = vld [vmem:[%s10623_s4 + $0x130] sm:$0xff]  ;;  %v1269_v41 = vld [vmem:[%s10623_s4 + $0x108] sm:$0xff] }
  0x43   :  { %8236 = vmatprep.subr.mxu0 %v9013_v2  ;;  %8247 = vmatprep.subr.mxu1 %v9013_v2  ;;  %v1268_v43 = vld [vmem:[%s10623_s4 + $0x100] sm:$0xff]  ;;  %v9608_v45 = vld [vmem:[%s10620_s1 + $0x8] sm:$0xff]  ;;  %v1279_v46 = vld [vmem:[%s10623_s4 + $0x158] sm:$0xff] }
  0x44   :  { %8237 = vmatpush3.msra.mxu0 %v93_v57  ;;  %8238 = vmatprep.mubr.msk.f32.mxu0 %vm9014_vm1, %v9013_v2  ;;  %v1272_v44 = vld [vmem:[%s10623_s4 + $0x120] sm:$0xff]  ;;  %v1283_v47 = vld [vmem:[%s10623_s4 + $0x178] sm:$0xff]  ;;  %v1278_v48 = vld [vmem:[%s10623_s4 + $0x150] sm:$0xff] }
  0x45   :  { %8248 = vmatpush3.msra.mxu1 %v97_v58  ;;  %8239 = vmatmul.mubr.msk.f32.vlgmr.msra.gmra.mxu0 %vm109_vm0, %v9276_v42  ;;  %v1282_v49 = vld [vmem:[%s10623_s4 + $0x170] sm:$0xff]  ;;  %v1277_v50 = vld [vmem:[%s10623_s4 + $0x148] sm:$0xff]  ;;  %v1276_v52 = vld [vmem:[%s10623_s4 + $0x140] sm:$0xff] }
  0x46   :  { %8249 = vmatprep.mubr.msk.f32.mxu1 %vm9014_vm1, %v9013_v2  ;;  %8252 = vmatprep.subr.mxu0 %v9013_v2  ;;  %v1281_v51 = vld [vmem:[%s10623_s4 + $0x168] sm:$0xff]  ;;  %v1280_v53 = vld [vmem:[%s10623_s4 + $0x160] sm:$0xff]  ;;  %v1287_v54 = vld [vmem:[%s10623_s4 + $0x198] sm:$0xff] }
  0x47   :  { %8263 = vmatprep.subr.mxu1 %v9013_v2  ;;  %8250 = vmatmul.mubr.msk.f32.vlgmr.msra.gmra.mxu1 %vm109_vm0, %v9276_v42  ;;  %v1291_v55 = vld [vmem:[%s10623_s4 + $0x1b8] sm:$0xff]  ;;  %v1286_v56 = vld [vmem:[%s10623_s4 + $0x190] sm:$0xff]  ;;  %v1285_v58 = vld [vmem:[%s10623_s4 + $0x188] sm:$0xff] }
  0x48   :  { %8253 = vmatpush3.msra.mxu0 %v104_v59  ;;  %8264 = vmatpush3.msra.mxu1 %v108_v60  ;;  %v1290_v57 = vld [vmem:[%s10623_s4 + $0x1b0] sm:$0xff]  ;;  %v1289_v59 = vld [vmem:[%s10623_s4 + $0x1a8] sm:$0xff]  ;;  %v1284_v60 = vld [vmem:[%s10623_s4 + $0x180] sm:$0xff] }
  0x49   :  { %8254 = vmatprep.subr.mxu0 %v9013_v2  ;;  %8265 = vmatprep.subr.mxu1 %v9013_v2 }
  0x4a   :  { %8255 = vmatpush3.msra.mxu0 %v103_v61  ;;  %8266 = vmatpush3.msra.mxu1 %v107_v62  ;;  %v1288_v61 = vld [vmem:[%s10623_s4 + $0x1a0] sm:$0xff]  ;;  %v1295_v62 = vld [vmem:[%s10623_s4 + $0x1d8] sm:$0xff] }
  0x4b   :  { %8256 = vmatprep.subr.mxu0 %v9013_v2  ;;  %8267 = vmatprep.subr.mxu1 %v9013_v2 }
  0x4c   :  { %8257 = vmatpush3.msra.mxu0 %v102_v63  ;;  %8268 = vmatpush3.msra.mxu1 %v106_v0  ;;  %v1299_v63 = vld [vmem:[%s10623_s4 + $0x1f8] sm:$0xff]  ;;  %v1294_v0 = vld [vmem:[%s10623_s4 + $0x1d0] sm:$0xff] }
  0x4d   :  { %8258 = vmatprep.subr.mxu0 %v9013_v2  ;;  %8269 = vmatprep.subr.mxu1 %v9013_v2 }
  0x4e   :  { %8259 = vmatpush3.msra.mxu0 %v101_v1  ;;  %8260 = vmatprep.mubr.msk.f32.mxu0 %vm9014_vm1, %v9013_v2  ;;  %v1298_v1 = vld [vmem:[%s10623_s4 + $0x1f0] sm:$0xff] }
  0x4f   :  { %8270 = vmatpush3.msra.mxu1 %v105_v3  ;;  %8261 = vmatmul.mubr.msk.f32.vlgmr.msra.gmra.mxu0 %vm109_vm0, %v9276_v42  ;;  %v1293_v3 = vld [vmem:[%s10623_s4 + $0x1c8] sm:$0xff] }
  0x50   :  { %8271 = vmatprep.mubr.msk.f32.mxu1 %vm9014_vm1, %v9013_v2  ;;  %8274 = vmatprep.subr.mxu0 %v9013_v2 }
  0x51   :  { %8285 = vmatprep.subr.mxu1 %v9013_v2  ;;  %8272 = vmatmul.mubr.msk.f32.vlgmr.msra.gmra.mxu1 %vm109_vm0, %v9276_v42  ;;  %v1273_v42 = vld [vmem:[%s10623_s4 + $0x128] sm:$0xff] }
  0x52   :  { %8275 = vmatpush3.msra.mxu0 %v1239_v4  ;;  %8286 = vmatpush3.msra.mxu1 %v1243_v5  ;;  %v1297_v4 = vld [vmem:[%s10623_s4 + $0x1e8] sm:$0xff]  ;;  %v1292_v5 = vld [vmem:[%s10623_s4 + $0x1c0] sm:$0xff] }
  0x53   :  { %8276 = vmatprep.subr.mxu0 %v9013_v2  ;;  %8287 = vmatprep.subr.mxu1 %v9013_v2 }
  0x54   :  { %8277 = vmatpush3.msra.mxu0 %v1238_v6  ;;  %8288 = vmatpush3.msra.mxu1 %v1242_v7  ;;  %v1296_v6 = vld [vmem:[%s10623_s4 + $0x1e0] sm:$0xff]  ;;  %v2429_v7 = vld [vmem:[%s10624_s5 + $0x18] sm:$0xff] }
  0x55   :  { %8278 = vmatprep.subr.mxu0 %v9013_v2  ;;  %8289 = vmatprep.subr.mxu1 %v9013_v2 }
  0x56   :  { %8279 = vmatpush3.msra.mxu0 %v1237_v8  ;;  %8290 = vmatpush3.msra.mxu1 %v1241_v9  ;;  %v2433_v8 = vld [vmem:[%s10624_s5 + $0x38] sm:$0xff]  ;;  %v2428_v9 = vld [vmem:[%s10624_s5 + $0x10] sm:$0xff] }
  0x57   :  { %8280 = vmatprep.subr.mxu0 %v9013_v2  ;;  %8291 = vmatprep.subr.mxu1 %v9013_v2 }
  0x58   :  { %8281 = vmatpush3.msra.mxu0 %v1236_v10  ;;  %8282 = vmatprep.mubr.msk.f32.mxu0 %vm9014_vm1, %v9013_v2  ;;  %v2432_v10 = vld [vmem:[%s10624_s5 + $0x30] sm:$0xff] }
  0x59   :  { %8292 = vmatpush3.msra.mxu1 %v1240_v11  ;;  %8293 = vmatprep.mubr.msk.f32.mxu1 %vm9014_vm1, %v9013_v2  ;;  %v2427_v11 = vld [vmem:[%s10624_s5 + $0x8] sm:$0xff] }
  0x5a   :  { %8283 = vmatmul.mubr.msk.f32.vlgmr.msra.gmra.mxu0 %vm109_vm0, %v9443_v12  ;;  %8294 = vmatmul.mubr.msk.f32.vlgmr.msra.gmra.mxu1 %vm109_vm0, %v9443_v12 }
  0x5b   :  { %8296 = vmatprep.subr.mxu0 %v9013_v2  ;;  %8307 = vmatprep.subr.mxu1 %v9013_v2 }
  0x5c   :  { %8297 = vmatpush3.msra.mxu0 %v1247_v13  ;;  %8308 = vmatpush3.msra.mxu1 %v1251_v14  ;;  %v2426_v13 = vld [vmem:[%s10624_s5] sm:$0xff] }
  0x5d   :  { %8298 = vmatprep.subr.mxu0 %v9013_v2  ;;  %8309 = vmatprep.subr.mxu1 %v9013_v2  ;;  %v2430_v14 = vld [vmem:[%s10624_s5 + $0x20] sm:$0xff] }
  0x5e   :  { %8299 = vmatpush3.msra.mxu0 %v1246_v15  ;;  %8310 = vmatpush3.msra.mxu1 %v1250_v16  ;;  %v9773_v15 = vld [vmem:[%s10621_s2] sm:$0xff]  ;;  %v2437_v16 = vld [vmem:[%s10624_s5 + $0x58] sm:$0xff] }
  0x5f   :  { %8300 = vmatprep.subr.mxu0 %v9013_v2  ;;  %8311 = vmatprep.subr.mxu1 %v9013_v2 }
  0x60   :  { %8301 = vmatpush3.msra.mxu0 %v1245_v17  ;;  %8312 = vmatpush3.msra.mxu1 %v1249_v18  ;;  %v2441_v17 = vld [vmem:[%s10624_s5 + $0x78] sm:$0xff]  ;;  %v2436_v18 = vld [vmem:[%s10624_s5 + $0x50] sm:$0xff] }
  0x61   :  { %8302 = vmatprep.subr.mxu0 %v9013_v2  ;;  %8313 = vmatprep.subr.mxu1 %v9013_v2 }
  0x62   :  { %8303 = vmatpush3.msra.mxu0 %v1244_v19  ;;  %8304 = vmatprep.mubr.msk.f32.mxu0 %vm9014_vm1, %v9013_v2  ;;  %v2440_v19 = vld [vmem:[%s10624_s5 + $0x70] sm:$0xff] }
  0x63   :  { %8314 = vmatpush3.msra.mxu1 %v1248_v20  ;;  %8315 = vmatprep.mubr.msk.f32.mxu1 %vm9014_vm1, %v9013_v2  ;;  %v2435_v20 = vld [vmem:[%s10624_s5 + $0x48] sm:$0xff] }
  0x64   :  { %8305 = vmatmul.mubr.msk.f32.vlgmr.msra.gmra.mxu0 %vm109_vm0, %v9443_v12  ;;  %8316 = vmatmul.mubr.msk.f32.vlgmr.msra.gmra.mxu1 %vm109_vm0, %v9443_v12 }
  0x65   :  { %8318 = vmatprep.subr.mxu0 %v9013_v2  ;;  %8329 = vmatprep.subr.mxu1 %v9013_v2 }
  0x66   :  { %8319 = vmatpush3.msra.mxu0 %v1255_v21  ;;  %8330 = vmatpush3.msra.mxu1 %v1259_v22  ;;  %v2439_v21 = vld [vmem:[%s10624_s5 + $0x68] sm:$0xff]  ;;  %v2434_v22 = vld [vmem:[%s10624_s5 + $0x40] sm:$0xff] }
  0x67   :  { %8320 = vmatprep.subr.mxu0 %v9013_v2  ;;  %8331 = vmatprep.subr.mxu1 %v9013_v2 }
  0x68   :  { %8321 = vmatpush3.msra.mxu0 %v1254_v23  ;;  %8332 = vmatpush3.msra.mxu1 %v1258_v24  ;;  %v2438_v23 = vld [vmem:[%s10624_s5 + $0x60] sm:$0xff]  ;;  %v2445_v24 = vld [vmem:[%s10624_s5 + $0x98] sm:$0xff] }
  0x69   :  { %8322 = vmatprep.subr.mxu0 %v9013_v2  ;;  %8333 = vmatprep.subr.mxu1 %v9013_v2 }
  0x6a   :  { %8323 = vmatpush3.msra.mxu0 %v1253_v25  ;;  %8334 = vmatpush3.msra.mxu1 %v1257_v26  ;;  %v2449_v25 = vld [vmem:[%s10624_s5 + $0xb8] sm:$0xff]  ;;  %v2444_v26 = vld [vmem:[%s10624_s5 + $0x90] sm:$0xff] }
  0x6b   :  { %8324 = vmatprep.subr.mxu0 %v9013_v2  ;;  %8335 = vmatprep.subr.mxu1 %v9013_v2 }
  0x6c   :  { %8325 = vmatpush3.msra.mxu0 %v1252_v27  ;;  %8326 = vmatprep.mubr.msk.f32.mxu0 %vm9014_vm1, %v9013_v2  ;;  %v2448_v27 = vld [vmem:[%s10624_s5 + $0xb0] sm:$0xff] }
  0x6d   :  { %8336 = vmatpush3.msra.mxu1 %v1256_v28  ;;  %8337 = vmatprep.mubr.msk.f32.mxu1 %vm9014_vm1, %v9013_v2  ;;  %v2443_v28 = vld [vmem:[%s10624_s5 + $0x88] sm:$0xff] }
  0x6e   :  { %8327 = vmatmul.mubr.msk.f32.vlgmr.msra.gmra.mxu0 %vm109_vm0, %v9443_v12  ;;  %8338 = vmatmul.mubr.msk.f32.vlgmr.msra.gmra.mxu1 %vm109_vm0, %v9443_v12 }
  0x6f   :  { %8340 = vmatprep.subr.mxu0 %v9013_v2  ;;  %8351 = vmatprep.subr.mxu1 %v9013_v2 }
  0x70   :  { %8341 = vmatpush3.msra.mxu0 %v1263_v29  ;;  %8352 = vmatpush3.msra.mxu1 %v1267_v30  ;;  %v2447_v29 = vld [vmem:[%s10624_s5 + $0xa8] sm:$0xff]  ;;  %v2442_v30 = vld [vmem:[%s10624_s5 + $0x80] sm:$0xff] }
  0x71   :  { %8342 = vmatprep.subr.mxu0 %v9013_v2  ;;  %8353 = vmatprep.subr.mxu1 %v9013_v2 }
  0x72   :  { %8343 = vmatpush3.msra.mxu0 %v1262_v31  ;;  %8354 = vmatpush3.msra.mxu1 %v1266_v32  ;;  %v2446_v31 = vld [vmem:[%s10624_s5 + $0xa0] sm:$0xff]  ;;  %v2453_v32 = vld [vmem:[%s10624_s5 + $0xd8] sm:$0xff] }
  0x73   :  { %8344 = vmatprep.subr.mxu0 %v9013_v2  ;;  %8355 = vmatprep.subr.mxu1 %v9013_v2 }
  0x74   :  { %8345 = vmatpush3.msra.mxu0 %v1261_v33  ;;  %8356 = vmatpush3.msra.mxu1 %v1265_v34  ;;  %v2457_v33 = vld [vmem:[%s10624_s5 + $0xf8] sm:$0xff]  ;;  %v2452_v34 = vld [vmem:[%s10624_s5 + $0xd0] sm:$0xff] }
  0x75   :  { %8346 = vmatprep.subr.mxu0 %v9013_v2  ;;  %8357 = vmatprep.subr.mxu1 %v9013_v2 }
  0x76   :  { %8347 = vmatpush3.msra.mxu0 %v1260_v35  ;;  %8348 = vmatprep.mubr.msk.f32.mxu0 %vm9014_vm1, %v9013_v2  ;;  %v2456_v35 = vld [vmem:[%s10624_s5 + $0xf0] sm:$0xff] }
  0x77   :  { %8358 = vmatpush3.msra.mxu1 %v1264_v36  ;;  %8359 = vmatprep.mubr.msk.f32.mxu1 %vm9014_vm1, %v9013_v2  ;;  %v2451_v36 = vld [vmem:[%s10624_s5 + $0xc8] sm:$0xff] }
  0x78   :  { %8349 = vmatmul.mubr.msk.f32.vlgmr.msra.gmra.mxu0 %vm109_vm0, %v9443_v12  ;;  %8360 = vmatmul.mubr.msk.f32.vlgmr.msra.gmra.mxu1 %vm109_vm0, %v9443_v12  ;;  %v2431_v12 = vld [vmem:[%s10624_s5 + $0x28] sm:$0xff] }
  0x79   :  { %8362 = vmatprep.subr.mxu0 %v9013_v2  ;;  %8373 = vmatprep.subr.mxu1 %v9013_v2 }
  0x7a   :  { %8363 = vmatpush3.msra.mxu0 %v1271_v37  ;;  %8374 = vmatpush3.msra.mxu1 %v1275_v38  ;;  %v2455_v37 = vld [vmem:[%s10624_s5 + $0xe8] sm:$0xff]  ;;  %v2450_v38 = vld [vmem:[%s10624_s5 + $0xc0] sm:$0xff] }
  0x7b   :  { %8364 = vmatprep.subr.mxu0 %v9013_v2  ;;  %8375 = vmatprep.subr.mxu1 %v9013_v2 }
  0x7c   :  { %8365 = vmatpush3.msra.mxu0 %v1270_v39  ;;  %8376 = vmatpush3.msra.mxu1 %v1274_v40  ;;  %v2454_v39 = vld [vmem:[%s10624_s5 + $0xe0] sm:$0xff]  ;;  %v2461_v40 = vld [vmem:[%s10624_s5 + $0x118] sm:$0xff] }
  0x7d   :  { %8366 = vmatprep.subr.mxu0 %v9013_v2  ;;  %8377 = vmatprep.subr.mxu1 %v9013_v2 }
  0x7e   :  { %8367 = vmatpush3.msra.mxu0 %v1269_v41  ;;  %8378 = vmatpush3.msra.mxu1 %v1273_v42  ;;  %v2465_v41 = vld [vmem:[%s10624_s5 + $0x138] sm:$0xff] }
  0x7f   :  { %8368 = vmatprep.subr.mxu0 %v9013_v2  ;;  %8379 = vmatprep.subr.mxu1 %v9013_v2 }
  0x80   :  { %8369 = vmatpush3.msra.mxu0 %v1268_v43  ;;  %8370 = vmatprep.mubr.msk.f32.mxu0 %vm9014_vm1, %v9013_v2  ;;  %v2460_v43 = vld [vmem:[%s10624_s5 + $0x110] sm:$0xff] }
  0x81   :  { %8380 = vmatpush3.msra.mxu1 %v1272_v44  ;;  %8381 = vmatprep.mubr.msk.f32.mxu1 %vm9014_vm1, %v9013_v2  ;;  %v2464_v44 = vld [vmem:[%s10624_s5 + $0x130] sm:$0xff] }
  0x82   :  { %8371 = vmatmul.mubr.msk.f32.vlgmr.msra.gmra.mxu0 %vm109_vm0, %v9608_v45  ;;  %8382 = vmatmul.mubr.msk.f32.vlgmr.msra.gmra.mxu1 %vm109_vm0, %v9608_v45 }
  0x83   :  { %8384 = vmatprep.subr.mxu0 %v9013_v2  ;;  %8395 = vmatprep.subr.mxu1 %v9013_v2 }
  0x84   :  { %8385 = vmatpush3.msra.mxu0 %v1279_v46  ;;  %8396 = vmatpush3.msra.mxu1 %v1283_v47  ;;  %v2459_v47 = vld [vmem:[%s10624_s5 + $0x108] sm:$0xff] }
  0x85   :  { %8386 = vmatprep.subr.mxu0 %v9013_v2  ;;  %8397 = vmatprep.subr.mxu1 %v9013_v2 }
  0x86   :  { %8387 = vmatpush3.msra.mxu0 %v1278_v48  ;;  %8398 = vmatpush3.msra.mxu1 %v1282_v49  ;;  %v2463_v48 = vld [vmem:[%s10624_s5 + $0x128] sm:$0xff] }
  0x87   :  { %8388 = vmatprep.subr.mxu0 %v9013_v2  ;;  %8399 = vmatprep.subr.mxu1 %v9013_v2 }
  0x88   :  { %8389 = vmatpush3.msra.mxu0 %v1277_v50  ;;  %8400 = vmatpush3.msra.mxu1 %v1281_v51  ;;  %v2458_v50 = vld [vmem:[%s10624_s5 + $0x100] sm:$0xff] }
  0x89   :  { %8390 = vmatprep.subr.mxu0 %v9013_v2  ;;  %8401 = vmatprep.subr.mxu1 %v9013_v2  ;;  %v2462_v51 = vld [vmem:[%s10624_s5 + $0x120] sm:$0xff] }
  0x8a   :  { %8391 = vmatpush3.msra.mxu0 %v1276_v52  ;;  %8392 = vmatprep.mubr.msk.f32.mxu0 %vm9014_vm1, %v9013_v2  ;;  %v9942_v52 = vld [vmem:[%s10621_s2 + $0x8] sm:$0xff] }
  0x8b   :  { %8402 = vmatpush3.msra.mxu1 %v1280_v53  ;;  %8403 = vmatprep.mubr.msk.f32.mxu1 %vm9014_vm1, %v9013_v2  ;;  %v2469_v53 = vld [vmem:[%s10624_s5 + $0x158] sm:$0xff] }
  0x8c   :  { %8393 = vmatmul.mubr.msk.f32.vlgmr.msra.gmra.mxu0 %vm109_vm0, %v9608_v45  ;;  %8404 = vmatmul.mubr.msk.f32.vlgmr.msra.gmra.mxu1 %vm109_vm0, %v9608_v45 }
  0x8d   :  { %8406 = vmatprep.subr.mxu0 %v9013_v2  ;;  %8417 = vmatprep.subr.mxu1 %v9013_v2 }
  0x8e   :  { %8407 = vmatpush3.msra.mxu0 %v1287_v54  ;;  %8418 = vmatpush3.msra.mxu1 %v1291_v55  ;;  %v2473_v54 = vld [vmem:[%s10624_s5 + $0x178] sm:$0xff] }
  0x8f   :  { %8408 = vmatprep.subr.mxu0 %v9013_v2  ;;  %8419 = vmatprep.subr.mxu1 %v9013_v2 }
  0x90   :  { %8409 = vmatpush3.msra.mxu0 %v1286_v56  ;;  %8420 = vmatpush3.msra.mxu1 %v1290_v57  ;;  %v2468_v56 = vld [vmem:[%s10624_s5 + $0x150] sm:$0xff] }
  0x91   :  { %8410 = vmatprep.subr.mxu0 %v9013_v2  ;;  %8421 = vmatprep.subr.mxu1 %v9013_v2  ;;  %v2472_v57 = vld [vmem:[%s10624_s5 + $0x170] sm:$0xff] }
  0x92   :  { %8411 = vmatpush3.msra.mxu0 %v1285_v58  ;;  %8422 = vmatpush3.msra.mxu1 %v1289_v59 }
  0x93   :  { %8412 = vmatprep.subr.mxu0 %v9013_v2  ;;  %8423 = vmatprep.subr.mxu1 %v9013_v2 }
  0x94   :  { %8413 = vmatpush3.msra.mxu0 %v1284_v60  ;;  %8414 = vmatprep.mubr.msk.f32.mxu0 %vm9014_vm1, %v9013_v2  ;;  %v2467_v60 = vld [vmem:[%s10624_s5 + $0x148] sm:$0xff] }
  0x95   :  { %8424 = vmatpush3.msra.mxu1 %v1288_v61  ;;  %8425 = vmatprep.mubr.msk.f32.mxu1 %vm9014_vm1, %v9013_v2  ;;  %v2471_v61 = vld [vmem:[%s10624_s5 + $0x168] sm:$0xff] }
  0x96   :  { %8415 = vmatmul.mubr.msk.f32.vlgmr.msra.gmra.mxu0 %vm109_vm0, %v9608_v45  ;;  %8426 = vmatmul.mubr.msk.f32.vlgmr.msra.gmra.mxu1 %vm109_vm0, %v9608_v45 }
  0x97   :  { %8428 = vmatprep.subr.mxu0 %v9013_v2  ;;  %8439 = vmatprep.subr.mxu1 %v9013_v2 }
  0x98   :  { %8429 = vmatpush3.msra.mxu0 %v1295_v62  ;;  %8440 = vmatpush3.msra.mxu1 %v1299_v63  ;;  %v2466_v63 = vld [vmem:[%s10624_s5 + $0x140] sm:$0xff] }
  0x99   :  { %8430 = vmatprep.subr.mxu0 %v9013_v2  ;;  %8441 = vmatprep.subr.mxu1 %v9013_v2 }
  0x9a   :  { %8431 = vmatpush3.msra.mxu0 %v1294_v0  ;;  %8442 = vmatpush3.msra.mxu1 %v1298_v1  ;;  %v2470_v0 = vld [vmem:[%s10624_s5 + $0x160] sm:$0xff]  ;;  %v2477_v1 = vld [vmem:[%s10624_s5 + $0x198] sm:$0xff] }
  0x9b   :  { %8432 = vmatprep.subr.mxu0 %v9013_v2  ;;  %8443 = vmatprep.subr.mxu1 %v9013_v2 }
  0x9c   :  { %8433 = vmatpush3.msra.mxu0 %v1293_v3  ;;  %8444 = vmatpush3.msra.mxu1 %v1297_v4  ;;  %v2481_v3 = vld [vmem:[%s10624_s5 + $0x1b8] sm:$0xff] }
  0x9d   :  { %8434 = vmatprep.subr.mxu0 %v9013_v2  ;;  %8445 = vmatprep.subr.mxu1 %v9013_v2 }
  0x9e   :  { %8435 = vmatpush3.msra.mxu0 %v1292_v5  ;;  %8436 = vmatprep.mubr.msk.f32.mxu0 %vm9014_vm1, %v9013_v2  ;;  %v2476_v5 = vld [vmem:[%s10624_s5 + $0x190] sm:$0xff] }
  0x9f   :  { %8446 = vmatpush3.msra.mxu1 %v1296_v6  ;;  %8447 = vmatprep.mubr.msk.f32.mxu1 %vm9014_vm1, %v9013_v2  ;;  %v2480_v6 = vld [vmem:[%s10624_s5 + $0x1b0] sm:$0xff] }
  0xa0   :  { %8437 = vmatmul.mubr.msk.f32.vlgmr.msra.gmra.mxu0 %vm109_vm0, %v9608_v45  ;;  %8448 = vmatmul.mubr.msk.f32.vlgmr.msra.gmra.mxu1 %vm109_vm0, %v9608_v45 }
  0xa1   :  { %8450 = vmatprep.subr.mxu0 %v9013_v2  ;;  %8461 = vmatprep.subr.mxu1 %v9013_v2 }
  0xa2   :  { %8451 = vmatpush3.msra.mxu0 %v2429_v7  ;;  %8462 = vmatpush3.msra.mxu1 %v2433_v8 }
  0xa3   :  { %8452 = vmatprep.subr.mxu0 %v9013_v2  ;;  %8463 = vmatprep.subr.mxu1 %v9013_v2 }
  0xa4   :  { %8453 = vmatpush3.msra.mxu0 %v2428_v9  ;;  %8464 = vmatpush3.msra.mxu1 %v2432_v10  ;;  %v2475_v9 = vld [vmem:[%s10624_s5 + $0x188] sm:$0xff] }
  0xa5   :  { %8454 = vmatprep.subr.mxu0 %v9013_v2  ;;  %8465 = vmatprep.subr.mxu1 %v9013_v2  ;;  %v2479_v10 = vld [vmem:[%s10624_s5 + $0x1a8] sm:$0xff] }
  0xa6   :  { %8455 = vmatpush3.msra.mxu0 %v2427_v11  ;;  %8466 = vmatpush3.msra.mxu1 %v2431_v12  ;;  %v2474_v12 = vld [vmem:[%s10624_s5 + $0x180] sm:$0xff] }
  0xa7   :  { %8456 = vmatprep.subr.mxu0 %v9013_v2  ;;  %8467 = vmatprep.subr.mxu1 %v9013_v2 }
  0xa8   :  { %8457 = vmatpush3.msra.mxu0 %v2426_v13  ;;  %8468 = vmatpush3.msra.mxu1 %v2430_v14  ;;  %v2478_v13 = vld [vmem:[%s10624_s5 + $0x1a0] sm:$0xff]  ;;  %v2485_v14 = vld [vmem:[%s10624_s5 + $0x1d8] sm:$0xff] }
  0xa9   :  { %8458 = vmatprep.mubr.msk.f32.mxu0 %vm9014_vm1, %v9013_v2  ;;  %8469 = vmatprep.mubr.msk.f32.mxu1 %vm9014_vm1, %v9013_v2 }
  0xaa   :  { %8472 = vmatprep.subr.mxu0 %v9013_v2  ;;  %8483 = vmatprep.subr.mxu1 %v9013_v2 }
  0xab   :  { %8459 = vmatmul.mubr.msk.f32.vlgmr.msra.gmra.mxu0 %vm109_vm0, %v9773_v15  ;;  %8470 = vmatmul.mubr.msk.f32.vlgmr.msra.gmra.mxu1 %vm109_vm0, %v9773_v15 }
  0xac   :  { %8473 = vmatpush3.msra.mxu0 %v2437_v16  ;;  %8484 = vmatpush3.msra.mxu1 %v2441_v17  ;;  %v2484_v17 = vld [vmem:[%s10624_s5 + $0x1d0] sm:$0xff] }
  0xad   :  { %8474 = vmatprep.subr.mxu0 %v9013_v2  ;;  %8485 = vmatprep.subr.mxu1 %v9013_v2 }
  0xae   :  { %8475 = vmatpush3.msra.mxu0 %v2436_v18  ;;  %8486 = vmatpush3.msra.mxu1 %v2440_v19  ;;  %v2488_v18 = vld [vmem:[%s10624_s5 + $0x1f0] sm:$0xff] }
  0xaf   :  { %8476 = vmatprep.subr.mxu0 %v9013_v2  ;;  %8487 = vmatprep.subr.mxu1 %v9013_v2 }
  0xb0   :  { %8477 = vmatpush3.msra.mxu0 %v2435_v20  ;;  %8488 = vmatpush3.msra.mxu1 %v2439_v21  ;;  %v2483_v21 = vld [vmem:[%s10624_s5 + $0x1c8] sm:$0xff] }
  0xb1   :  { %8478 = vmatprep.subr.mxu0 %v9013_v2  ;;  %8489 = vmatprep.subr.mxu1 %v9013_v2 }
  0xb2   :  { %8479 = vmatpush3.msra.mxu0 %v2434_v22  ;;  %8490 = vmatpush3.msra.mxu1 %v2438_v23  ;;  %v2487_v22 = vld [vmem:[%s10624_s5 + $0x1e8] sm:$0xff] }
  0xb3   :  { %8480 = vmatprep.mubr.msk.f32.mxu0 %vm9014_vm1, %v9013_v2  ;;  %8491 = vmatprep.mubr.msk.f32.mxu1 %vm9014_vm1, %v9013_v2 }
  0xb4   :  { %8494 = vmatprep.subr.mxu0 %v9013_v2  ;;  %8505 = vmatprep.subr.mxu1 %v9013_v2 }
  0xb5   :  { %8481 = vmatmul.mubr.msk.f32.vlgmr.msra.gmra.mxu0 %vm109_vm0, %v9773_v15  ;;  %8492 = vmatmul.mubr.msk.f32.vlgmr.msra.gmra.mxu1 %vm109_vm0, %v9773_v15 }
  0xb6   :  { %8495 = vmatpush3.msra.mxu0 %v2445_v24  ;;  %8506 = vmatpush3.msra.mxu1 %v2449_v25  ;;  %v2482_v24 = vld [vmem:[%s10624_s5 + $0x1c0] sm:$0xff] }
  0xb7   :  { %8496 = vmatprep.subr.mxu0 %v9013_v2  ;;  %8507 = vmatprep.subr.mxu1 %v9013_v2  ;;  %v2486_v25 = vld [vmem:[%s10624_s5 + $0x1e0] sm:$0xff] }
  0xb8   :  { %8497 = vmatpush3.msra.mxu0 %v2444_v26  ;;  %8508 = vmatpush3.msra.mxu1 %v2448_v27 }
  0xb9   :  { %8498 = vmatprep.subr.mxu0 %v9013_v2  ;;  %8509 = vmatprep.subr.mxu1 %v9013_v2 }
  0xba   :  { %8499 = vmatpush3.msra.mxu0 %v2443_v28  ;;  %8510 = vmatpush3.msra.mxu1 %v2447_v29 }
  0xbb   :  { %8500 = vmatprep.subr.mxu0 %v9013_v2  ;;  %8511 = vmatprep.subr.mxu1 %v9013_v2 }
  0xbc   :  { %8501 = vmatpush3.msra.mxu0 %v2442_v30  ;;  %8512 = vmatpush3.msra.mxu1 %v2446_v31 }
  0xbd   :  { %8502 = vmatprep.mubr.msk.f32.mxu0 %vm9014_vm1, %v9013_v2  ;;  %8513 = vmatprep.mubr.msk.f32.mxu1 %vm9014_vm1, %v9013_v2 }
  0xbe   :  { %8516 = vmatprep.subr.mxu0 %v9013_v2  ;;  %8527 = vmatprep.subr.mxu1 %v9013_v2 }
  0xbf   :  { %8503 = vmatmul.mubr.msk.f32.vlgmr.msra.gmra.mxu0 %vm109_vm0, %v9773_v15  ;;  %8514 = vmatmul.mubr.msk.f32.vlgmr.msra.gmra.mxu1 %vm109_vm0, %v9773_v15 }
  0xc0   :  { %8517 = vmatpush3.msra.mxu0 %v2453_v32  ;;  %8528 = vmatpush3.msra.mxu1 %v2457_v33 }
  0xc1   :  { %8518 = vmatprep.subr.mxu0 %v9013_v2  ;;  %8529 = vmatprep.subr.mxu1 %v9013_v2 }
  0xc2   :  { %8519 = vmatpush3.msra.mxu0 %v2452_v34  ;;  %8530 = vmatpush3.msra.mxu1 %v2456_v35 }
  0xc3   :  { %8520 = vmatprep.subr.mxu0 %v9013_v2  ;;  %8531 = vmatprep.subr.mxu1 %v9013_v2 }
  0xc4   :  { %8521 = vmatpush3.msra.mxu0 %v2451_v36  ;;  %8532 = vmatpush3.msra.mxu1 %v2455_v37 }
  0xc5   :  { %8522 = vmatprep.subr.mxu0 %v9013_v2  ;;  %8533 = vmatprep.subr.mxu1 %v9013_v2 }
  0xc6   :  { %8523 = vmatpush3.msra.mxu0 %v2450_v38  ;;  %8534 = vmatpush3.msra.mxu1 %v2454_v39 }
  0xc7   :  { %8524 = vmatprep.mubr.msk.f32.mxu0 %vm9014_vm1, %v9013_v2  ;;  %8535 = vmatprep.mubr.msk.f32.mxu1 %vm9014_vm1, %v9013_v2 }
  0xc8   :  { %8538 = vmatprep.subr.mxu0 %v9013_v2  ;;  %8549 = vmatprep.subr.mxu1 %v9013_v2 }
  0xc9   :  { %v9907_v42 = vpop.f32.mrf.mxu0  ;;  %8525 = vmatmul.mubr.msk.f32.vlgmr.msra.gmra.mxu0 %vm109_vm0, %v9773_v15  ;;  %8536 = vmatmul.mubr.msk.f32.vlgmr.msra.gmra.mxu1 %vm109_vm0, %v9773_v15  ;;  %v2489_v15 = vld [vmem:[%s10624_s5 + $0x1f8] sm:$0xff] }
  0xca   :  { %8539 = vmatpush3.msra.mxu0 %v2461_v40  ;;  %8550 = vmatpush3.msra.mxu1 %v2465_v41 }
  0xcb   :  { %v9919_v45 = vpop.f32.mrf.mxu1  ;;  %v8108_v46 = vpop.f32.mrf.mxu0  ;;  %8540 = vmatprep.subr.mxu0 %v9013_v2  ;;  %8551 = vmatprep.subr.mxu1 %v9013_v2 }
  0xcc   :  { %8541 = vmatpush3.msra.mxu0 %v2460_v43  ;;  %8552 = vmatpush3.msra.mxu1 %v2464_v44 }
  0xcd   :  { %v8119_v49 = vpop.f32.mrf.mxu1  ;;  %8542 = vmatprep.subr.mxu0 %v9013_v2  ;;  %8553 = vmatprep.subr.mxu1 %v9013_v2 }
  0xce   :  { %8543 = vmatpush3.msra.mxu0 %v2459_v47  ;;  %8554 = vmatpush3.msra.mxu1 %v2463_v48 }
  0xcf   :  { %8544 = vmatprep.subr.mxu0 %v9013_v2  ;;  %8555 = vmatprep.subr.mxu1 %v9013_v2 }
  0xd0   :  { %8545 = vmatpush3.msra.mxu0 %v2458_v50  ;;  %8556 = vmatpush3.msra.mxu1 %v2462_v51 }
  0xd1   :  { %8546 = vmatprep.mubr.msk.f32.mxu0 %vm9014_vm1, %v9013_v2  ;;  %8557 = vmatprep.mubr.msk.f32.mxu1 %vm9014_vm1, %v9013_v2 }
  0xd2   :  { %8560 = vmatprep.subr.mxu0 %v9013_v2  ;;  %8571 = vmatprep.subr.mxu1 %v9013_v2 }
  0xd3   :  { %v9956_v55 = vpop.f32.mrf.mxu0  ;;  %8547 = vmatmul.mubr.msk.f32.vlgmr.msra.gmra.mxu0 %vm109_vm0, %v9942_v52  ;;  %8558 = vmatmul.mubr.msk.f32.vlgmr.msra.gmra.mxu1 %vm109_vm0, %v9942_v52 }
  0xd4   :  { %8561 = vmatpush3.msra.mxu0 %v2469_v53  ;;  %8572 = vmatpush3.msra.mxu1 %v2473_v54 }
  0xd5   :  { %v9968_v58 = vpop.f32.mrf.mxu1  ;;  %v8130_v59 = vpop.f32.mrf.mxu0  ;;  %8562 = vmatprep.subr.mxu0 %v9013_v2  ;;  %8573 = vmatprep.subr.mxu1 %v9013_v2 }
  0xd6   :  { %8563 = vmatpush3.msra.mxu0 %v2468_v56  ;;  %8574 = vmatpush3.msra.mxu1 %v2472_v57 }
  0xd7   :  { %v8141_v62 = vpop.f32.mrf.mxu1  ;;  %8564 = vmatprep.subr.mxu0 %v9013_v2  ;;  %8575 = vmatprep.subr.mxu1 %v9013_v2 }
  0xd8   :  { %8565 = vmatpush3.msra.mxu0 %v2467_v60  ;;  %8576 = vmatpush3.msra.mxu1 %v2471_v61 }
  0xd9   :  { %8566 = vmatprep.subr.mxu0 %v9013_v2  ;;  %8577 = vmatprep.subr.mxu1 %v9013_v2 }
  0xda   :  { %8567 = vmatpush3.msra.mxu0 %v2466_v63  ;;  %8578 = vmatpush3.msra.mxu1 %v2470_v0 }
  0xdb   :  { %8568 = vmatprep.mubr.msk.f32.mxu0 %vm9014_vm1, %v9013_v2  ;;  %8579 = vmatprep.mubr.msk.f32.mxu1 %vm9014_vm1, %v9013_v2 }
  0xdc   :  { %8582 = vmatprep.subr.mxu0 %v9013_v2  ;;  %8593 = vmatprep.subr.mxu1 %v9013_v2 }
  0xdd   :  { %v10000_v4 = vpop.f32.mrf.mxu0  ;;  %8569 = vmatmul.mubr.msk.f32.vlgmr.msra.gmra.mxu0 %vm109_vm0, %v9942_v52  ;;  %8580 = vmatmul.mubr.msk.f32.vlgmr.msra.gmra.mxu1 %vm109_vm0, %v9942_v52 }
  0xde   :  { %8583 = vmatpush3.msra.mxu0 %v2477_v1  ;;  %8594 = vmatpush3.msra.mxu1 %v2481_v3 }
  0xdf   :  { %v10012_v7 = vpop.f32.mrf.mxu1  ;;  %v8152_v8 = vpop.f32.mrf.mxu0  ;;  %8584 = vmatprep.subr.mxu0 %v9013_v2  ;;  %8595 = vmatprep.subr.mxu1 %v9013_v2 }
  0xe0   :  { %8585 = vmatpush3.msra.mxu0 %v2476_v5  ;;  %8596 = vmatpush3.msra.mxu1 %v2480_v6 }
  0xe1   :  { %v8163_v11 = vpop.f32.mrf.mxu1  ;;  %8586 = vmatprep.subr.mxu0 %v9013_v2  ;;  %8597 = vmatprep.subr.mxu1 %v9013_v2 }
  0xe2   :  { %8587 = vmatpush3.msra.mxu0 %v2475_v9  ;;  %8598 = vmatpush3.msra.mxu1 %v2479_v10 }
  0xe3   :  { %8588 = vmatprep.subr.mxu0 %v9013_v2  ;;  %8599 = vmatprep.subr.mxu1 %v9013_v2 }
  0xe4   :  { %8589 = vmatpush3.msra.mxu0 %v2474_v12  ;;  %8600 = vmatpush3.msra.mxu1 %v2478_v13 }
  0xe5   :  { %8590 = vmatprep.mubr.msk.f32.mxu0 %vm9014_vm1, %v9013_v2  ;;  %8601 = vmatprep.mubr.msk.f32.mxu1 %vm9014_vm1, %v9013_v2 }
  0xe6   :  { %8604 = vmatprep.subr.mxu0 %v9013_v2  ;;  %8615 = vmatprep.subr.mxu1 %v9013_v2 }
  0xe7   :  { %v10044_v16 = vpop.f32.mrf.mxu0  ;;  %8591 = vmatmul.mubr.msk.f32.vlgmr.msra.gmra.mxu0 %vm109_vm0, %v9942_v52  ;;  %8602 = vmatmul.mubr.msk.f32.vlgmr.msra.gmra.mxu1 %vm109_vm0, %v9942_v52 }
  0xe8   :  { %8605 = vmatpush3.msra.mxu0 %v2485_v14  ;;  %8616 = vmatpush3.msra.mxu1 %v2489_v15 }
  0xe9   :  { %v10056_v19 = vpop.f32.mrf.mxu1  ;;  %v8174_v20 = vpop.f32.mrf.mxu0  ;;  %8606 = vmatprep.subr.mxu0 %v9013_v2  ;;  %8617 = vmatprep.subr.mxu1 %v9013_v2 }
  0xea   :  { %8607 = vmatpush3.msra.mxu0 %v2484_v17  ;;  %8618 = vmatpush3.msra.mxu1 %v2488_v18 }
  0xeb   :  { %v8185_v23 = vpop.f32.mrf.mxu1  ;;  %8608 = vmatprep.subr.mxu0 %v9013_v2  ;;  %8619 = vmatprep.subr.mxu1 %v9013_v2 }
  0xec   :  { %8609 = vmatpush3.msra.mxu0 %v2483_v21  ;;  %8620 = vmatpush3.msra.mxu1 %v2487_v22 }
  0xed   :  { %8610 = vmatprep.subr.mxu0 %v9013_v2  ;;  %8621 = vmatprep.subr.mxu1 %v9013_v2 }
  0xee   :  { %8611 = vmatpush3.msra.mxu0 %v2482_v24  ;;  %8612 = vmatprep.mubr.msk.f32.mxu0 %vm9014_vm1, %v9013_v2 }
  0xef   :  { %8622 = vmatpush3.msra.mxu1 %v2486_v25  ;;  %8623 = vmatprep.mubr.msk.f32.mxu1 %vm9014_vm1, %v9013_v2 }
  0xf0   :  { %8613 = vmatmul.mubr.msk.f32.vlgmr.msra.gmra.mxu0 %vm109_vm0, %v9942_v52  ;;  %8624 = vmatmul.mubr.msk.f32.vlgmr.msra.gmra.mxu1 %vm109_vm0, %v9942_v52 }
  0xf1   :  { %v10084_v26 = vpop.f32.mrf.mxu0  ;;  %8626 = vmatprep.subr.mxu0 %v9013_v2  ;;  %8631 = vmatprep.subr.mxu1 %v9013_v2 }
  0xf2   :  { %8628 = vmatprep.mubr.msk.f32.mxu0 %vm9014_vm1, %v9013_v2  ;;  %8633 = vmatprep.mubr.msk.f32.mxu1 %vm9014_vm1, %v9013_v2 }
  0xf3   :  { %v10092_v27 = vpop.f32.mrf.mxu1  ;;  %v8196_v28 = vpop.f32.mrf.mxu0 }
  0xf5   :  { %v8207_v29 = vpop.f32.mrf.mxu1 }
  0xfb   :  { %v10094_v30 = vpop.f32.mrf.mxu0 }
  0xfd   :  { %v10096_v31 = vpop.f32.mrf.mxu1  ;;  %v8218_v32 = vpop.f32.mrf.mxu0 }
  0xff   :  { %v8229_v33 = vpop.f32.mrf.mxu1 }
 0x105   :  { %v10098_v34 = vpop.f32.mrf.mxu0 }
 0x107   :  { %v10100_v35 = vpop.f32.mrf.mxu1  ;;  %v8240_v36 = vpop.f32.mrf.mxu0 }
 0x109   :  { %v8251_v37 = vpop.f32.mrf.mxu1 }
 0x10f   :  { %v10102_v38 = vpop.f32.mrf.mxu0 }
 0x111   :  { %v10104_v39 = vpop.f32.mrf.mxu1  ;;  %v8262_v40 = vpop.f32.mrf.mxu0 }
 0x113   :  { %v8273_v41 = vpop.f32.mrf.mxu1 }
 0x11a   :  { %v1369_v43 = vpop.f32.mrf.mxu0  ;;  %v1439_v44 = vpop.f32.mrf.mxu1 }
 0x11b   :  { %8627 = vmatpush3.xpose.msk.msra.mxu0 %vm3616_vm2, %v1369_v43  ;;  %8632 = vmatpush3.xpose.msk.msra.mxu1 %vm3616_vm2, %v1439_v44 }
 0x11c   :  { %v8284_v46 = vpop.f32.mrf.mxu0  ;;  %v8295_v47 = vpop.f32.mrf.mxu1  ;;  %8636 = vmatprep.subr.mxu0 %v9013_v2  ;;  %8641 = vmatprep.subr.mxu1 %v9013_v2 }
 0x11e   :  { %8629 = vmatmul.mubr.msk.f32.vlgmr.msra.gmra.mxu0 %vm3616_vm2, %v9907_v42  ;;  %8634 = vmatmul.mubr.msk.f32.vlgmr.msra.gmra.mxu1 %vm3616_vm2, %v9919_v45 }
 0x11f   :  { %8638 = vmatprep.mubr.msk.f32.mxu0 %vm9014_vm1, %v9013_v2  ;;  %8643 = vmatprep.mubr.msk.f32.mxu1 %vm9014_vm1, %v9013_v2 }
 0x124   :  { %v1509_v48 = vpop.f32.mrf.mxu0  ;;  %v1579_v49 = vpop.f32.mrf.mxu1 }
 0x125   :  { %8637 = vmatpush3.xpose.msk.msra.mxu0 %vm3616_vm2, %v1509_v48  ;;  %8642 = vmatpush3.xpose.msk.msra.mxu1 %vm3616_vm2, %v1579_v49 }
 0x126   :  { %v8306_v50 = vpop.f32.mrf.mxu0  ;;  %v8317_v51 = vpop.f32.mrf.mxu1  ;;  %8646 = vmatprep.subr.mxu0 %v9013_v2  ;;  %8651 = vmatprep.subr.mxu1 %v9013_v2 }
 0x128   :  { %8639 = vmatmul.mubr.msk.f32.vlgmr.msra.gmra.mxu0 %vm3616_vm2, %v9956_v55  ;;  %8644 = vmatmul.mubr.msk.f32.vlgmr.msra.gmra.mxu1 %vm3616_vm2, %v9968_v58 }
 0x129   :  { %8648 = vmatprep.mubr.msk.f32.mxu0 %vm9014_vm1, %v9013_v2  ;;  %8653 = vmatprep.mubr.msk.f32.mxu1 %vm9014_vm1, %v9013_v2 }
 0x12e   :  { %v1649_v42 = vpop.f32.mrf.mxu0  ;;  %v1719_v45 = vpop.f32.mrf.mxu1 }
 0x12f   :  { %8647 = vmatpush3.xpose.msk.msra.mxu0 %vm3616_vm2, %v1649_v42  ;;  %8652 = vmatpush3.xpose.msk.msra.mxu1 %vm3616_vm2, %v1719_v45 }
 0x130   :  { %v8328_v52 = vpop.f32.mrf.mxu0  ;;  %v8339_v53 = vpop.f32.mrf.mxu1  ;;  %8656 = vmatprep.subr.mxu0 %v9013_v2  ;;  %8661 = vmatprep.subr.mxu1 %v9013_v2 }
 0x132   :  { %8649 = vmatmul.mubr.msk.f32.vlgmr.msra.gmra.mxu0 %vm3616_vm2, %v10000_v4  ;;  %8654 = vmatmul.mubr.msk.f32.vlgmr.msra.gmra.mxu1 %vm3616_vm2, %v10012_v7 }
 0x133   :  { %8658 = vmatprep.mubr.msk.f32.mxu0 %vm9014_vm1, %v9013_v2  ;;  %8663 = vmatprep.mubr.msk.f32.mxu1 %vm9014_vm1, %v9013_v2 }
 0x138   :  { %v1789_v54 = vpop.f32.mrf.mxu0  ;;  %v1859_v55 = vpop.f32.mrf.mxu1 }
 0x139   :  { %8657 = vmatpush3.xpose.msk.msra.mxu0 %vm3616_vm2, %v1789_v54  ;;  %8662 = vmatpush3.xpose.msk.msra.mxu1 %vm3616_vm2, %v1859_v55 }
 0x13a   :  { %v8350_v56 = vpop.f32.mrf.mxu0  ;;  %v8361_v57 = vpop.f32.mrf.mxu1  ;;  %8666 = vmatprep.subr.mxu0 %v9013_v2  ;;  %8671 = vmatprep.subr.mxu1 %v9013_v2 }
 0x13c   :  { %8659 = vmatmul.mubr.msk.f32.vlgmr.msra.gmra.mxu0 %vm3616_vm2, %v10044_v16  ;;  %8664 = vmatmul.mubr.msk.f32.vlgmr.msra.gmra.mxu1 %vm3616_vm2, %v10056_v19 }
 0x13d   :  { %8668 = vmatprep.mubr.msk.f32.mxu0 %vm9014_vm1, %v9013_v2  ;;  %8673 = vmatprep.mubr.msk.f32.mxu1 %vm9014_vm1, %v9013_v2 }
 0x142   :  { %v1932_v58 = vpop.f32.mrf.mxu0  ;;  %v2002_v59 = vpop.f32.mrf.mxu1 }
 0x143   :  { %8667 = vmatpush3.xpose.msk.msra.mxu0 %vm3616_vm2, %v1932_v58  ;;  %8672 = vmatpush3.xpose.msk.msra.mxu1 %vm3616_vm2, %v2002_v59 }
 0x144   :  { %v8372_v60 = vpop.f32.mrf.mxu0  ;;  %v8383_v61 = vpop.f32.mrf.mxu1  ;;  %8676 = vmatprep.subr.mxu0 %v9013_v2  ;;  %8681 = vmatprep.subr.mxu1 %v9013_v2 }
 0x146   :  { %8669 = vmatmul.mubr.msk.f32.vlgmr.msra.gmra.mxu0 %vm3616_vm2, %v10084_v26  ;;  %8674 = vmatmul.mubr.msk.f32.vlgmr.msra.gmra.mxu1 %vm3616_vm2, %v10092_v27 }
 0x147   :  { %8678 = vmatprep.mubr.msk.f32.mxu0 %vm9014_vm1, %v9013_v2  ;;  %8683 = vmatprep.mubr.msk.f32.mxu1 %vm9014_vm1, %v9013_v2 }
 0x14c   :  { %v2072_v62 = vpop.f32.mrf.mxu0  ;;  %v2142_v63 = vpop.f32.mrf.mxu1 }
 0x14d   :  { %8677 = vmatpush3.xpose.msk.msra.mxu0 %vm3616_vm2, %v2072_v62  ;;  %8682 = vmatpush3.xpose.msk.msra.mxu1 %vm3616_vm2, %v2142_v63 }
 0x14e   :  { %v8394_v0 = vpop.f32.mrf.mxu0  ;;  %v8405_v1 = vpop.f32.mrf.mxu1  ;;  %8686 = vmatprep.subr.mxu0 %v9013_v2  ;;  %8691 = vmatprep.subr.mxu1 %v9013_v2 }
 0x150   :  { %8679 = vmatmul.mubr.msk.f32.vlgmr.msra.gmra.mxu0 %vm3616_vm2, %v10094_v30  ;;  %8684 = vmatmul.mubr.msk.f32.vlgmr.msra.gmra.mxu1 %vm3616_vm2, %v10096_v31 }
 0x151   :  { %8688 = vmatprep.mubr.msk.f32.mxu0 %vm9014_vm1, %v9013_v2  ;;  %8693 = vmatprep.mubr.msk.f32.mxu1 %vm9014_vm1, %v9013_v2 }
 0x156   :  { %v2212_v3 = vpop.f32.mrf.mxu0  ;;  %v2282_v4 = vpop.f32.mrf.mxu1 }
 0x157   :  { %8687 = vmatpush3.xpose.msk.msra.mxu0 %vm3616_vm2, %v2212_v3  ;;  %8692 = vmatpush3.xpose.msk.msra.mxu1 %vm3616_vm2, %v2282_v4 }
 0x158   :  { %v8416_v5 = vpop.f32.mrf.mxu0  ;;  %v8427_v6 = vpop.f32.mrf.mxu1  ;;  %8696 = vmatprep.subr.mxu0 %v9013_v2  ;;  %8701 = vmatprep.subr.mxu1 %v9013_v2 }
 0x15a   :  { %8689 = vmatmul.mubr.msk.f32.vlgmr.msra.gmra.mxu0 %vm3616_vm2, %v10098_v34  ;;  %8694 = vmatmul.mubr.msk.f32.vlgmr.msra.gmra.mxu1 %vm3616_vm2, %v10100_v35 }
 0x15b   :  { %8698 = vmatprep.mubr.msk.f32.mxu0 %vm9014_vm1, %v9013_v2  ;;  %8703 = vmatprep.mubr.msk.f32.mxu1 %vm9014_vm1, %v9013_v2 }
 0x160   :  { %v2352_v7 = vpop.f32.mrf.mxu0  ;;  %v2422_v8 = vpop.f32.mrf.mxu1 }
 0x161   :  { %8697 = vmatpush3.xpose.msk.msra.mxu0 %vm3616_vm2, %v2352_v7  ;;  %8702 = vmatpush3.xpose.msk.msra.mxu1 %vm3616_vm2, %v2422_v8 }
 0x162   :  { %v8438_v9 = vpop.f32.mrf.mxu0  ;;  %v8449_v10 = vpop.f32.mrf.mxu1  ;;  %8706 = vmatprep.subr.mxu0 %v9013_v2  ;;  %8711 = vmatprep.subr.mxu1 %v9013_v2 }
 0x164   :  { %8699 = vmatmul.mubr.msk.f32.vlgmr.msra.gmra.mxu0 %vm3616_vm2, %v10102_v38  ;;  %8704 = vmatmul.mubr.msk.f32.vlgmr.msra.gmra.mxu1 %vm3616_vm2, %v10104_v39 }
 0x165   :  { %8708 = vmatprep.mubr.msk.f32.mxu0 %vm9014_vm1, %v9013_v2  ;;  %8713 = vmatprep.mubr.msk.f32.mxu1 %vm9014_vm1, %v9013_v2 }
 0x16b   :  { %v2559_v11 = vpop.f32.mrf.mxu0  ;;  %v2629_v12 = vpop.f32.mrf.mxu1 }
 0x16c   :  { %8707 = vmatpush3.msra.mxu0 %v2559_v11  ;;  %8712 = vmatpush3.msra.mxu1 %v2629_v12 }
 0x16d   :  { %v8460_v13 = vpop.f32.mrf.mxu0  ;;  %v8471_v14 = vpop.f32.mrf.mxu1  ;;  %8716 = vmatprep.subr.mxu0 %v9013_v2  ;;  %8721 = vmatprep.subr.mxu1 %v9013_v2 }
 0x175   :  { %v10204_v15 = vpop.f32.mrf.mxu0  ;;  %v10206_v16 = vpop.f32.mrf.mxu1 }
 0x177   :  { %v8482_v17 = vpop.f32.mrf.mxu0  ;;  %v8493_v18 = vpop.f32.mrf.mxu1 }
 0x17f   :  { %v10208_v19 = vpop.f32.mrf.mxu0  ;;  %v10210_v20 = vpop.f32.mrf.mxu1 }
 0x181   :  { %v8504_v21 = vpop.f32.mrf.mxu0  ;;  %v8515_v22 = vpop.f32.mrf.mxu1 }
 0x189   :  { %v10212_v23 = vpop.f32.mrf.mxu0  ;;  %v10214_v24 = vpop.f32.mrf.mxu1 }
 0x18b   :  { %v8526_v25 = vpop.f32.mrf.mxu0  ;;  %v8537_v26 = vpop.f32.mrf.mxu1 }
 0x193   :  { %v10216_v27 = vpop.f32.mrf.mxu0  ;;  %v10218_v28 = vpop.f32.mrf.mxu1 }
 0x195   :  { %v8548_v29 = vpop.f32.mrf.mxu0  ;;  %v8559_v30 = vpop.f32.mrf.mxu1 }
 0x19d   :  { %v10220_v31 = vpop.f32.mrf.mxu0  ;;  %v10222_v32 = vpop.f32.mrf.mxu1 }
 0x19f   :  { %v8570_v33 = vpop.f32.mrf.mxu0  ;;  %v8581_v34 = vpop.f32.mrf.mxu1 }
 0x1a7   :  { %v10224_v35 = vpop.f32.mrf.mxu0  ;;  %v10226_v36 = vpop.f32.mrf.mxu1 }
 0x1a9   :  { %v8592_v37 = vpop.f32.mrf.mxu0  ;;  %v8603_v38 = vpop.f32.mrf.mxu1 }
 0x1b0   :  { %v10228_v39 = vpop.f32.mrf.mxu0  ;;  %v10230_v40 = vpop.f32.mrf.mxu1 }
 0x1b2   :  { %v8614_v41 = vpop.f32.mrf.mxu0  ;;  %v8625_v43 = vpop.f32.mrf.mxu1 }
 0x1de   :  { %v3689_v44 = vpop.f32.mrf.mxu0  ;;  %v3765_v46 = vpop.f32.mrf.mxu1 }
 0x1df   :  { %v10232_v47 = vmul.f32 0.24999994, %v3689_v44  ;;  %v10234_v50 = vmul.f32 0.24999994, %v3765_v46 }
 0x1e0   :  { %v8630_v48 = vpop.f32.mrf.mxu0  ;;  %v8635_v49 = vpop.f32.mrf.mxu1 }
 0x1e1   :  { %v4850_v51 = vsel %vm4849_vm3, %v10232_v47, -inf  ;;  %v4853_v42 = vsel %vm4849_vm3, %v10234_v50, -inf }
 0x1e2   :  { %4851 = vmax.xlane.f32.xlu0 %v4850_v51 }
 0x1e6   :  { %4854 = vmax.xlane.f32.xlu0 %v4853_v42 }
 0x1e8   :  { %v3917_v45 = vpop.f32.mrf.mxu1  ;;  %v3841_v52 = vpop.f32.mrf.mxu0 }
 0x1e9   :  { %v10240_v53 = vmul.f32 0.24999994, %v3841_v52  ;;  %v10242_v56 = vmul.f32 0.24999994, %v3917_v45 }
 0x1ea   :  { %v8640_v54 = vpop.f32.mrf.mxu0  ;;  %v8645_v55 = vpop.f32.mrf.mxu1 }
 0x1eb   :  { %v4856_v57 = vsel %vm4849_vm3, %v10240_v53, -inf  ;;  %v4859_v58 = vsel %vm4849_vm3, %v10242_v56, -inf }
 0x1ec   :  { %4857 = vmax.xlane.f32.xlu1 %v4856_v57 }
 0x1f0   :  { %4860 = vmax.xlane.f32.xlu1 %v4859_v58 }
 0x1f2   :  { %v4069_v59 = vpop.f32.mrf.mxu1  ;;  %v3993_v60 = vpop.f32.mrf.mxu0 }
 0x1f3   :  { %v10248_v61 = vmul.f32 0.24999994, %v4069_v59  ;;  %v10250_v62 = vmul.f32 0.24999994, %v3993_v60 }
 0x1f4   :  { %v8650_v63 = vpop.f32.mrf.mxu0  ;;  %v8655_v0 = vpop.f32.mrf.mxu1 }
 0x1f5   :  { %v4865_v1 = vsel %vm4849_vm3, %v10248_v61, -inf  ;;  %v4862_v3 = vsel %vm4849_vm3, %v10250_v62, -inf }
 0x1f6   :  { %4866 = vmax.xlane.f32.xlu1 %v4865_v1  ;;  %4863 = vmax.xlane.f32.xlu0 %v4862_v3 }
 0x1fc   :  { %v4145_v4 = vpop.f32.mrf.mxu0  ;;  %v4221_v5 = vpop.f32.mrf.mxu1 }
 0x1fd   :  { %v10256_v6 = vmul.f32 0.24999994, %v4145_v4  ;;  %v10258_v7 = vmul.f32 0.24999994, %v4221_v5 }
 0x1fe   :  { %v8660_v8 = vpop.f32.mrf.mxu0  ;;  %v8665_v9 = vpop.f32.mrf.mxu1 }
 0x1ff   :  { %v4871_v10 = vsel %vm4849_vm3, %v10258_v7, -inf  ;;  %v4868_v11 = vsel %vm4849_vm3, %v10256_v6, -inf }
 0x200   :  { %4872 = vmax.xlane.f32.xlu1 %v4871_v10  ;;  %4869 = vmax.xlane.f32.xlu0 %v4868_v11 }
 0x206   :  { %v4297_v12 = vpop.f32.mrf.mxu0  ;;  %v4373_v13 = vpop.f32.mrf.mxu1 }
 0x207   :  { %v10264_v14 = vmul.f32 0.24999994, %v4297_v12  ;;  %v10266_v17 = vmul.f32 0.24999994, %v4373_v13 }
 0x208   :  { %v8670_v18 = vpop.f32.mrf.mxu0  ;;  %v8675_v21 = vpop.f32.mrf.mxu1 }
 0x209   :  { %v4877_v22 = vsel %vm4849_vm3, %v10266_v17, -inf  ;;  %v4874_v25 = vsel %vm4849_vm3, %v10264_v14, -inf }
 0x20a   :  { %4878 = vmax.xlane.f32.xlu1 %v4877_v22  ;;  %4875 = vmax.xlane.f32.xlu0 %v4874_v25 }
 0x210   :  { %v4449_v26 = vpop.f32.mrf.mxu0  ;;  %v4525_v29 = vpop.f32.mrf.mxu1 }
 0x211   :  { %v10272_v30 = vmul.f32 0.24999994, %v4449_v26  ;;  %v10274_v33 = vmul.f32 0.24999994, %v4525_v29 }
 0x212   :  { %v8680_v34 = vpop.f32.mrf.mxu0  ;;  %v8685_v37 = vpop.f32.mrf.mxu1 }
 0x213   :  { %v4883_v38 = vsel %vm4849_vm3, %v10274_v33, -inf  ;;  %v4880_v41 = vsel %vm4849_vm3, %v10272_v30, -inf }
 0x214   :  { %4884 = vmax.xlane.f32.xlu1 %v4883_v38  ;;  %4881 = vmax.xlane.f32.xlu0 %v4880_v41 }
 0x21a   :  { %v4601_v43 = vpop.f32.mrf.mxu0  ;;  %v4677_v44 = vpop.f32.mrf.mxu1 }
 0x21b   :  { %v10280_v46 = vmul.f32 0.24999994, %v4601_v43  ;;  %v10282_v48 = vmul.f32 0.24999994, %v4677_v44 }
 0x21c   :  { %v8690_v49 = vpop.f32.mrf.mxu0  ;;  %v8695_v51 = vpop.f32.mrf.mxu1 }
 0x21d   :  { %v4889_v42 = vsel %vm4849_vm3, %v10282_v48, -inf  ;;  %v4886_v45 = vsel %vm4849_vm3, %v10280_v46, -inf }
 0x21e   :  { %4890 = vmax.xlane.f32.xlu1 %v4889_v42  ;;  %4887 = vmax.xlane.f32.xlu0 %v4886_v45 }
 0x224   :  { %v4753_v52 = vpop.f32.mrf.mxu0  ;;  %v4829_v54 = vpop.f32.mrf.mxu1 }
 0x225   :  { %v10288_v55 = vmul.f32 0.24999994, %v4753_v52  ;;  %v10290_v57 = vmul.f32 0.24999994, %v4829_v54 }
 0x226   :  { %v8700_v58 = vpop.f32.mrf.mxu0  ;;  %v8705_v59 = vpop.f32.mrf.mxu1 }
 0x227   :  { %v4895_v60 = vsel %vm4849_vm3, %v10290_v57, -inf  ;;  %v4892_v63 = vsel %vm4849_vm3, %v10288_v55, -inf }
 0x228   :  { %4896 = vmax.xlane.f32.xlu1 %v4895_v60  ;;  %4893 = vmax.xlane.f32.xlu0 %v4892_v63 }
 0x26b   :  { %v4852_v0 = vpop.xlane.xlu0 %4851 }
 0x26c   :  { %v4898_v1 = vsub.f32 %v10232_v47, %v4852_v0 }
 0x26e   :  { %v4914_v3 = vmul.f32 1.442695, %v4898_v1 }
 0x26f   :  { %v4855_v4 = vpop.xlane.xlu0 %4854 }
 0x270   :  { %8925 = vpow2.f32 %v4914_v3  ;;  %v4899_v5 = vsub.f32 %v10234_v50, %v4855_v4 }
 0x272   :  { %v4916_v8 = vmul.f32 1.442695, %v4899_v5 }
 0x274   :  { %8927 = vpow2.f32 %v4916_v8 }
 0x275   :  { %v4858_v9 = vpop.xlane.xlu1 %4857 }
 0x276   :  { %v4900_v10 = vsub.f32 %v10240_v53, %v4858_v9 }
 0x278   :  { %v4918_v11 = vmul.f32 1.442695, %v4900_v10 }
 0x279   :  { %v4861_v12 = vpop.xlane.xlu1 %4860 }
 0x27a   :  { %8929 = vpow2.f32 %v4918_v11  ;;  %v4901_v13 = vsub.f32 %v10242_v56, %v4861_v12 }
 0x27c   :  { %v4920_v18 = vmul.f32 1.442695, %v4901_v13 }
 0x27d   :  { %v8926_v21 = vpop.eup %8925 }
 0x27e   :  { %8931 = vpow2.f32 %v4920_v18  ;;  %8709 = vmatmul.mubr.msk.f32.vlgmr.msra.gmra.mxu0 %vm4849_vm3, %v8926_v21  ;;  %v4946_v47 = vsel %vm4849_vm3, %v8926_v21, 0.0 }
 0x27f   :  { %v4867_v22 = vpop.xlane.xlu1 %4866  ;;  %v4864_v25 = vpop.xlane.xlu0 %4863  ;;  %8717 = vmatpush3.msra.mxu0 %v10204_v15  ;;  %4947 = vadd.xlane.f32.xlu0 %v4946_v47 }
 0x280   :  { %v4903_v50 = vsub.f32 %v10248_v61, %v4867_v22  ;;  %v4902_v53 = vsub.f32 %v10250_v62, %v4864_v25  ;;  %8718 = vmatprep.mubr.msk.f32.mxu0 %vm9014_vm1, %v9013_v2  ;;  %8726 = vmatprep.subr.mxu0 %v9013_v2 }
 0x281   :  { %v8928_v56 = vpop.eup %8927 }
 0x282   :  { %v4924_v26 = vmul.f32 1.442695, %v4903_v50  ;;  %v4922_v29 = vmul.f32 1.442695, %v4902_v53  ;;  %8714 = vmatmul.mubr.msk.f32.vlgmr.msra.gmra.mxu1 %vm4849_vm3, %v8928_v56  ;;  %v4949_v34 = vsel %vm4849_vm3, %v8928_v56, 0.0  ;;  %v6195_v53 = vld [vmem:[%s10625_s6 + $0x8] sm:$0xff] }
 0x283   :  { %8722 = vmatpush3.msra.mxu1 %v10206_v16  ;;  %4950 = vadd.xlane.f32.xlu1 %v4949_v34  ;;  %v6194_v56 = vld [vmem:[%s10625_s6] sm:$0xff] }
 0x284   :  { %8933 = vpow2.f32 %v4924_v26  ;;  %8723 = vmatprep.mubr.msk.f32.mxu1 %vm9014_vm1, %v9013_v2  ;;  %8731 = vmatprep.subr.mxu1 %v9013_v2  ;;  %v6197_v26 = vld [vmem:[%s10625_s6 + $0x18] sm:$0xff] }
 0x285   :  { %8935 = vpow2.f32 %v4922_v29  ;;  %v6196_v29 = vld [vmem:[%s10625_s6 + $0x10] sm:$0xff] }
 0x287   :  { %v8930_v15 = vpop.eup %8929 }
 0x288   :  { %8719 = vmatmul.mubr.msk.f32.vlgmr.msra.gmra.mxu0 %vm4849_vm3, %v8930_v15  ;;  %v4952_v61 = vsel %vm4849_vm3, %v8930_v15, 0.0 }
 0x289   :  { %v4873_v62 = vpop.xlane.xlu1 %4872  ;;  %v4870_v37 = vpop.xlane.xlu0 %4869  ;;  %8727 = vmatpush3.msra.mxu0 %v10208_v19  ;;  %4953 = vadd.xlane.f32.xlu0 %v4952_v61 }
 0x28a   :  { %v4905_v16 = vsub.f32 %v10258_v7, %v4873_v62  ;;  %v4904_v38 = vsub.f32 %v10256_v6, %v4870_v37  ;;  %8728 = vmatprep.mubr.msk.f32.mxu0 %vm9014_vm1, %v9013_v2  ;;  %8736 = vmatprep.subr.mxu0 %v9013_v2 }
 0x28b   :  { %v8932_v41 = vpop.eup %8931 }
 0x28c   :  { %v4928_v43 = vmul.f32 1.442695, %v4905_v16  ;;  %v4926_v44 = vmul.f32 1.442695, %v4904_v38  ;;  %8724 = vmatmul.mubr.msk.f32.vlgmr.msra.gmra.mxu1 %vm4849_vm3, %v8932_v41  ;;  %v4955_v49 = vsel %vm4849_vm3, %v8932_v41, 0.0  ;;  %v6199_v41 = vld [vmem:[%s10625_s6 + $0x28] sm:$0xff] }
 0x28d   :  { %8732 = vmatpush3.msra.mxu1 %v10210_v20  ;;  %4956 = vadd.xlane.f32.xlu1 %v4955_v49 }
 0x28e   :  { %8937 = vpow2.f32 %v4928_v43  ;;  %8733 = vmatprep.mubr.msk.f32.mxu1 %vm9014_vm1, %v9013_v2  ;;  %8741 = vmatprep.subr.mxu1 %v9013_v2 }
 0x28f   :  { %8939 = vpow2.f32 %v4926_v44  ;;  %v6198_v44 = vld [vmem:[%s10625_s6 + $0x20] sm:$0xff] }
 0x291   :  { %v8934_v19 = vpop.eup %8933 }
 0x292   :  { %v8936_v6 = vpop.eup %8935  ;;  %8734 = vmatmul.mubr.msk.f32.vlgmr.msra.gmra.mxu1 %vm4849_vm3, %v8934_v19  ;;  %v4961_v7 = vsel %vm4849_vm3, %v8934_v19, 0.0 }
 0x293   :  { %v4879_v51 = vpop.xlane.xlu1 %4878  ;;  %v4876_v42 = vpop.xlane.xlu0 %4875  ;;  %8729 = vmatmul.mubr.msk.f32.vlgmr.msra.gmra.mxu0 %vm4849_vm3, %v8936_v6  ;;  %8742 = vmatpush3.msra.mxu1 %v10214_v24  ;;  %v4958_v20 = vsel %vm4849_vm3, %v8936_v6, 0.0 }
 0x294   :  { %v4907_v45 = vsub.f32 %v10266_v17, %v4879_v51  ;;  %v4906_v52 = vsub.f32 %v10264_v14, %v4876_v42  ;;  %8737 = vmatpush3.msra.mxu0 %v10212_v23  ;;  %4962 = vadd.xlane.f32.xlu1 %v4961_v7  ;;  %v6201_v42 = vld [vmem:[%s10625_s6 + $0x38] sm:$0xff] }
 0x295   :  { %4959 = vadd.xlane.f32.xlu0 %v4958_v20  ;;  %8738 = vmatprep.mubr.msk.f32.mxu0 %vm9014_vm1, %v9013_v2 }
 0x296   :  { %v4932_v54 = vmul.f32 1.442695, %v4907_v45  ;;  %v4930_v58 = vmul.f32 1.442695, %v4906_v52  ;;  %8743 = vmatprep.mubr.msk.f32.mxu1 %vm9014_vm1, %v9013_v2  ;;  %8746 = vmatprep.subr.mxu0 %v9013_v2  ;;  %v6200_v45 = vld [vmem:[%s10625_s6 + $0x30] sm:$0xff] }
 0x297   :  { %8751 = vmatprep.subr.mxu1 %v9013_v2 }
 0x298   :  { %8941 = vpow2.f32 %v4932_v54 }
 0x299   :  { %8943 = vpow2.f32 %v4930_v58 }
 0x29b   :  { %v8938_v24 = vpop.eup %8937 }
 0x29c   :  { %v8940_v14 = vpop.eup %8939  ;;  %8744 = vmatmul.mubr.msk.f32.vlgmr.msra.gmra.mxu1 %vm4849_vm3, %v8938_v24  ;;  %v4967_v23 = vsel %vm4849_vm3, %v8938_v24, 0.0  ;;  %v6203_v24 = vld [vmem:[%s10625_s6 + $0x48] sm:$0xff] }
 0x29d   :  { %v4885_v17 = vpop.xlane.xlu1 %4884  ;;  %v4882_v59 = vpop.xlane.xlu0 %4881  ;;  %8739 = vmatmul.mubr.msk.f32.vlgmr.msra.gmra.mxu0 %vm4849_vm3, %v8940_v14  ;;  %8752 = vmatpush3.msra.mxu1 %v10218_v28  ;;  %v4964_v60 = vsel %vm4849_vm3, %v8940_v14, 0.0 }
 0x29e   :  { %v4909_v63 = vsub.f32 %v10274_v33, %v4885_v17  ;;  %v4908_v0 = vsub.f32 %v10272_v30, %v4882_v59  ;;  %8747 = vmatpush3.msra.mxu0 %v10216_v27  ;;  %4968 = vadd.xlane.f32.xlu1 %v4967_v23  ;;  %v6202_v23 = vld [vmem:[%s10625_s6 + $0x40] sm:$0xff] }
 0x29f   :  { %4965 = vadd.xlane.f32.xlu0 %v4964_v60  ;;  %8748 = vmatprep.mubr.msk.f32.mxu0 %vm9014_vm1, %v9013_v2 }
 0x2a0   :  { %v4936_v1 = vmul.f32 1.442695, %v4909_v63  ;;  %v4934_v3 = vmul.f32 1.442695, %v4908_v0  ;;  %8753 = vmatprep.mubr.msk.f32.mxu1 %vm9014_vm1, %v9013_v2  ;;  %8756 = vmatprep.subr.mxu0 %v9013_v2 }
 0x2a1   :  { %8761 = vmatprep.subr.mxu1 %v9013_v2 }
 0x2a2   :  { %8945 = vpow2.f32 %v4936_v1  ;;  %v6205_v1 = vld [vmem:[%s10625_s6 + $0x58] sm:$0xff] }
 0x2a3   :  { %8947 = vpow2.f32 %v4934_v3 }
 0x2a5   :  { %v8942_v28 = vpop.eup %8941 }
 0x2a6   :  { %v8944_v30 = vpop.eup %8943  ;;  %8754 = vmatmul.mubr.msk.f32.vlgmr.msra.gmra.mxu1 %vm4849_vm3, %v8942_v28  ;;  %v4973_v27 = vsel %vm4849_vm3, %v8942_v28, 0.0  ;;  %v6204_v28 = vld [vmem:[%s10625_s6 + $0x50] sm:$0xff] }
 0x2a7   :  { %v4891_v33 = vpop.xlane.xlu1 %4890  ;;  %v4888_v4 = vpop.xlane.xlu0 %4887  ;;  %8749 = vmatmul.mubr.msk.f32.vlgmr.msra.gmra.mxu0 %vm4849_vm3, %v8944_v30  ;;  %8762 = vmatpush3.msra.mxu1 %v10222_v32  ;;  %v4970_v5 = vsel %vm4849_vm3, %v8944_v30, 0.0 }
 0x2a8   :  { %v4911_v8 = vsub.f32 %v10282_v48, %v4891_v33  ;;  %v4910_v9 = vsub.f32 %v10280_v46, %v4888_v4  ;;  %8757 = vmatpush3.msra.mxu0 %v10220_v31  ;;  %4974 = vadd.xlane.f32.xlu1 %v4973_v27 }
 0x2a9   :  { %4971 = vadd.xlane.f32.xlu0 %v4970_v5  ;;  %8758 = vmatprep.mubr.msk.f32.mxu0 %vm9014_vm1, %v9013_v2 }
 0x2aa   :  { %v4940_v10 = vmul.f32 1.442695, %v4911_v8  ;;  %v4938_v11 = vmul.f32 1.442695, %v4910_v9  ;;  %8763 = vmatprep.mubr.msk.f32.mxu1 %vm9014_vm1, %v9013_v2  ;;  %8766 = vmatprep.subr.mxu0 %v9013_v2  ;;  %v6209_v8 = vld [vmem:[%s10625_s6 + $0x78] sm:$0xff] }
 0x2ab   :  { %8771 = vmatprep.subr.mxu1 %v9013_v2 }
 0x2ac   :  { %8949 = vpow2.f32 %v4940_v10 }
 0x2ad   :  { %8951 = vpow2.f32 %v4938_v11  ;;  %v6207_v11 = vld [vmem:[%s10625_s6 + $0x68] sm:$0xff] }
 0x2af   :  { %v8946_v32 = vpop.eup %8945 }
 0x2b0   :  { %v8948_v46 = vpop.eup %8947  ;;  %8764 = vmatmul.mubr.msk.f32.vlgmr.msra.gmra.mxu1 %vm4849_vm3, %v8946_v32  ;;  %v4979_v31 = vsel %vm4849_vm3, %v8946_v32, 0.0 }
 0x2b1   :  { %v4897_v48 = vpop.xlane.xlu1 %4896  ;;  %v4894_v12 = vpop.xlane.xlu0 %4893  ;;  %8759 = vmatmul.mubr.msk.f32.vlgmr.msra.gmra.mxu0 %vm4849_vm3, %v8948_v46  ;;  %8772 = vmatpush3.msra.mxu1 %v10226_v36  ;;  %v4976_v13 = vsel %vm4849_vm3, %v8948_v46, 0.0 }
 0x2b2   :  { %v4913_v18 = vsub.f32 %v10290_v57, %v4897_v48  ;;  %v4912_v21 = vsub.f32 %v10288_v55, %v4894_v12  ;;  %8767 = vmatpush3.msra.mxu0 %v10224_v35  ;;  %4980 = vadd.xlane.f32.xlu1 %v4979_v31  ;;  %v6206_v31 = vld [vmem:[%s10625_s6 + $0x60] sm:$0xff]  ;;  %v6208_v48 = vld [vmem:[%s10625_s6 + $0x70] sm:$0xff] }
 0x2b3   :  { %4977 = vadd.xlane.f32.xlu0 %v4976_v13  ;;  %8768 = vmatprep.mubr.msk.f32.mxu0 %vm9014_vm1, %v9013_v2 }
 0x2b4   :  { %v4944_v47 = vmul.f32 1.442695, %v4913_v18  ;;  %v4942_v22 = vmul.f32 1.442695, %v4912_v21  ;;  %8773 = vmatprep.mubr.msk.f32.mxu1 %vm9014_vm1, %v9013_v2  ;;  %8776 = vmatprep.subr.mxu0 %v9013_v2 }
 0x2b5   :  { %8781 = vmatprep.subr.mxu1 %v9013_v2 }
 0x2b6   :  { %8953 = vpow2.f32 %v4944_v47 }
 0x2b7   :  { %8955 = vpow2.f32 %v4942_v22 }
 0x2b9   :  { %v8950_v36 = vpop.eup %8949 }
 0x2ba   :  { %v8952_v55 = vpop.eup %8951  ;;  %8774 = vmatmul.mubr.msk.f32.vlgmr.msra.gmra.mxu1 %vm4849_vm3, %v8950_v36  ;;  %v4985_v35 = vsel %vm4849_vm3, %v8950_v36, 0.0  ;;  %v6213_v36 = vld [vmem:[%s10625_s6 + $0x98] sm:$0xff] }
 0x2bb   :  { %8769 = vmatmul.mubr.msk.f32.vlgmr.msra.gmra.mxu0 %vm4849_vm3, %v8952_v55  ;;  %8782 = vmatpush3.msra.mxu1 %v10230_v40  ;;  %v4982_v57 = vsel %vm4849_vm3, %v8952_v55, 0.0 }
 0x2bc   :  { %8777 = vmatpush3.msra.mxu0 %v10228_v39  ;;  %4986 = vadd.xlane.f32.xlu1 %v4985_v35 }
 0x2bd   :  { %4983 = vadd.xlane.f32.xlu0 %v4982_v57  ;;  %8778 = vmatprep.mubr.msk.f32.mxu0 %vm9014_vm1, %v9013_v2  ;;  %v6211_v57 = vld [vmem:[%s10625_s6 + $0x88] sm:$0xff] }
 0x2be   :  { %8783 = vmatprep.mubr.msk.f32.mxu1 %vm9014_vm1, %v9013_v2  ;;  %8786 = vmatprep.subr.mxu0 %v9013_v2 }
 0x2bf   :  { %8793 = vmatprep.subr.mxu1 %v9013_v2 }
 0x2c3   :  { %v8954_v25 = vpop.eup %8953 }
 0x2c4   :  { %v8956_v50 = vpop.eup %8955  ;;  %8784 = vmatmul.mubr.msk.f32.vlgmr.msra.gmra.mxu1 %vm4849_vm3, %v8954_v25  ;;  %v4991_v40 = vsel %vm4849_vm3, %v8954_v25, 0.0 }
 0x2c5   :  { %8779 = vmatmul.mubr.msk.f32.vlgmr.msra.gmra.mxu0 %vm4849_vm3, %v8956_v50  ;;  %4992 = vadd.xlane.f32.xlu1 %v4991_v40  ;;  %v4988_v39 = vsel %vm4849_vm3, %v8956_v50, 0.0  ;;  %v6210_v40 = vld [vmem:[%s10625_s6 + $0x80] sm:$0xff] }
 0x2c6   :  { %4989 = vadd.xlane.f32.xlu0 %v4988_v39  ;;  %8790 = vmatprep.mubr.msk.f32.mxu0 %vm9014_vm1, %v9013_v2  ;;  %v6212_v39 = vld [vmem:[%s10625_s6 + $0x90] sm:$0xff] }
 0x2c7   :  { %8797 = vmatprep.mubr.msk.f32.mxu1 %vm9014_vm1, %v9013_v2  ;;  %8787 = vmatpush3.msra.mxu0 %v6195_v53 }
 0x2c8   :  { %8788 = vmatprep.subr.mxu0 %v9013_v2  ;;  %8794 = vmatpush3.msra.mxu1 %v6197_v26 }
 0x2c9   :  { %8789 = vmatpush3.msra.mxu0 %v6194_v56  ;;  %8795 = vmatprep.subr.mxu1 %v9013_v2 }
 0x2ca   :  { %8800 = vmatprep.subr.mxu0 %v9013_v2  ;;  %8796 = vmatpush3.msra.mxu1 %v6196_v29 }
 0x2cb   :  { %8807 = vmatprep.subr.mxu1 %v9013_v2 }
 0x308   :  { %v4948_v34 = vpop.xlane.xlu0 %4947 }
 0x309   :  { %8957 = vrcp.f32 %v4948_v34 }
 0x30c   :  { %v4951_v15 = vpop.xlane.xlu1 %4950 }
 0x30d   :  { %8959 = vrcp.f32 %v4951_v15 }
 0x312   :  { %v4954_v61 = vpop.xlane.xlu0 %4953 }
 0x313   :  { %8961 = vrcp.f32 %v4954_v61  ;;  %v6217_v61 = vld [vmem:[%s10625_s6 + $0xb8] sm:$0xff] }
 0x316   :  { %v4957_v62 = vpop.xlane.xlu1 %4956  ;;  %v8958_v37 = vpop.eup %8957 }
 0x317   :  { %8963 = vrcp.f32 %v4957_v62 }
 0x31a   :  { %v8960_v49 = vpop.eup %8959 }
 0x31d   :  { %v4963_v19 = vpop.xlane.xlu1 %4962 }
 0x31e   :  { %v4960_v7 = vpop.xlane.xlu0 %4959  ;;  %8965 = vrcp.f32 %v4963_v19 }
 0x31f   :  { %8967 = vrcp.f32 %v4960_v7 }
 0x320   :  { %v8962_v52 = vpop.eup %8961 }
 0x324   :  { %v8964_v17 = vpop.eup %8963 }
 0x327   :  { %v4969_v59 = vpop.xlane.xlu1 %4968 }
 0x328   :  { %v4966_v63 = vpop.xlane.xlu0 %4965  ;;  %8969 = vrcp.f32 %v4969_v59 }
 0x329   :  { %8971 = vrcp.f32 %v4966_v63 }
 0x32b   :  { %v8966_v30 = vpop.eup %8965 }
 0x32c   :  { %v8968_v33 = vpop.eup %8967 }
 0x331   :  { %v4975_v46 = vpop.xlane.xlu1 %4974 }
 0x332   :  { %v4972_v12 = vpop.xlane.xlu0 %4971  ;;  %8973 = vrcp.f32 %v4975_v46 }
 0x333   :  { %8975 = vrcp.f32 %v4972_v12  ;;  %v7413_v12 = vld [vmem:[%s10626_s7 + $0x18] sm:$0xff] }
 0x335   :  { %v8970_v13 = vpop.eup %8969 }
 0x336   :  { %v8972_v21 = vpop.eup %8971 }
 0x33b   :  { %v4981_v50 = vpop.xlane.xlu1 %4980 }
 0x33c   :  { %v4978_v53 = vpop.xlane.xlu0 %4977  ;;  %8977 = vrcp.f32 %v4981_v50 }
 0x33d   :  { %8979 = vrcp.f32 %v4978_v53 }
 0x33e   :  { %v5063_v16 = vpop.f32.mrf.mxu0 }
 0x33f   :  { %v6178_v38 = vmul.f32 %v8958_v37, %v5063_v16  ;;  %v8974_v56 = vpop.eup %8973  ;;  %v6215_v16 = vld [vmem:[%s10625_s6 + $0xa8] sm:$0xff] }
 0x340   :  { %v8710_v43 = vpop.f32.mrf.mxu0  ;;  %v8976_v29 = vpop.eup %8975 }
 0x341   :  { %8791 = vmatmul.mubr.msk.f32.vlgmr.msra.gmra.mxu0 %vm3616_vm2, %v6178_v38  ;;  %v6214_v43 = vld [vmem:[%s10625_s6 + $0xa0] sm:$0xff] }
 0x342   :  { %v5136_v6 = vpop.f32.mrf.mxu1  ;;  %8801 = vmatpush3.msra.mxu0 %v6199_v41  ;;  %8804 = vmatprep.mubr.msk.f32.mxu0 %vm9014_vm1, %v9013_v2 }
 0x343   :  { %v6179_v51 = vmul.f32 %v8960_v49, %v5136_v6  ;;  %8802 = vmatprep.subr.mxu0 %v9013_v2 }
 0x344   :  { %v8715_v20 = vpop.f32.mrf.mxu1  ;;  %8803 = vmatpush3.msra.mxu0 %v6198_v44  ;;  %v6216_v44 = vld [vmem:[%s10625_s6 + $0xb0] sm:$0xff] }
 0x345   :  { %8798 = vmatmul.mubr.msk.f32.vlgmr.msra.gmra.mxu1 %vm3616_vm2, %v6179_v51  ;;  %8814 = vmatprep.subr.mxu0 %v9013_v2  ;;  %v4987_v41 = vpop.xlane.xlu1 %4986  ;;  %v6221_v20 = vld [vmem:[%s10625_s6 + $0xd8] sm:$0xff] }
 0x346   :  { %8808 = vmatpush3.msra.mxu1 %v6201_v42  ;;  %8811 = vmatprep.mubr.msk.f32.mxu1 %vm9014_vm1, %v9013_v2  ;;  %v4984_v49 = vpop.xlane.xlu0 %4983  ;;  %8981 = vrcp.f32 %v4987_v41 }
 0x347   :  { %8809 = vmatprep.subr.mxu1 %v9013_v2  ;;  %8983 = vrcp.f32 %v4984_v49 }
 0x348   :  { %v5209_v54 = vpop.f32.mrf.mxu0  ;;  %8810 = vmatpush3.msra.mxu1 %v6200_v45 }
 0x349   :  { %v6180_v58 = vmul.f32 %v8962_v52, %v5209_v54  ;;  %8821 = vmatprep.subr.mxu1 %v9013_v2  ;;  %v8978_v19 = vpop.eup %8977  ;;  %v6219_v54 = vld [vmem:[%s10625_s6 + $0xc8] sm:$0xff] }
 0x34a   :  { %v8720_v14 = vpop.f32.mrf.mxu0  ;;  %v8980_v7 = vpop.eup %8979 }
 0x34b   :  { %8805 = vmatmul.mubr.msk.f32.vlgmr.msra.gmra.mxu0 %vm3616_vm2, %v6180_v58  ;;  %v6218_v14 = vld [vmem:[%s10625_s6 + $0xc0] sm:$0xff] }
 0x34c   :  { %v5282_v60 = vpop.f32.mrf.mxu1  ;;  %8815 = vmatpush3.msra.mxu0 %v6203_v24  ;;  %8818 = vmatprep.mubr.msk.f32.mxu0 %vm9014_vm1, %v9013_v2 }
 0x34d   :  { %v6181_v0 = vmul.f32 %v8964_v17, %v5282_v60  ;;  %8816 = vmatprep.subr.mxu0 %v9013_v2 }
 0x34e   :  { %v8725_v3 = vpop.f32.mrf.mxu1  ;;  %8817 = vmatpush3.msra.mxu0 %v6202_v23  ;;  %v4993_v24 = vpop.xlane.xlu1 %4992  ;;  %v6220_v23 = vld [vmem:[%s10625_s6 + $0xd0] sm:$0xff] }
 0x34f   :  { %8812 = vmatmul.mubr.msk.f32.vlgmr.msra.gmra.mxu1 %vm3616_vm2, %v6181_v0  ;;  %8828 = vmatprep.subr.mxu0 %v9013_v2  ;;  %v4990_v17 = vpop.xlane.xlu0 %4989  ;;  %8985 = vrcp.f32 %v4993_v24  ;;  %v6225_v3 = vld [vmem:[%s10625_s6 + $0xf8] sm:$0xff] }
 0x350   :  { %8822 = vmatpush3.msra.mxu1 %v6205_v1  ;;  %8825 = vmatprep.mubr.msk.f32.mxu1 %vm9014_vm1, %v9013_v2  ;;  %8987 = vrcp.f32 %v4990_v17 }
 0x351   :  { %8823 = vmatprep.subr.mxu1 %v9013_v2 }
 0x352   :  { %v5428_v27 = vpop.f32.mrf.mxu1  ;;  %8824 = vmatpush3.msra.mxu1 %v6204_v28 }
 0x353   :  { %v5355_v4 = vpop.f32.mrf.mxu0  ;;  %v6183_v5 = vmul.f32 %v8966_v30, %v5428_v27  ;;  %8835 = vmatprep.subr.mxu1 %v9013_v2  ;;  %v8982_v59 = vpop.eup %8981  ;;  %v6223_v27 = vld [vmem:[%s10625_s6 + $0xe8] sm:$0xff] }
 0x354   :  { %v6182_v9 = vmul.f32 %v8968_v33, %v5355_v4  ;;  %v8735_v10 = vpop.f32.mrf.mxu1  ;;  %v8984_v63 = vpop.eup %8983  ;;  %v6222_v4 = vld [vmem:[%s10625_s6 + $0xe0] sm:$0xff] }
 0x355   :  { %v8730_v32 = vpop.f32.mrf.mxu0  ;;  %8826 = vmatmul.mubr.msk.f32.vlgmr.msra.gmra.mxu1 %vm3616_vm2, %v6183_v5  ;;  %v6224_v5 = vld [vmem:[%s10625_s6 + $0xf0] sm:$0xff] }
 0x356   :  { %8819 = vmatmul.mubr.msk.f32.vlgmr.msra.gmra.mxu0 %vm3616_vm2, %v6182_v9  ;;  %8836 = vmatpush3.msra.mxu1 %v6209_v8 }
 0x357   :  { %8829 = vmatpush3.msra.mxu0 %v6207_v11  ;;  %8837 = vmatprep.subr.mxu1 %v9013_v2 }
 0x358   :  { %8830 = vmatprep.subr.mxu0 %v9013_v2  ;;  %8832 = vmatprep.mubr.msk.f32.mxu0 %vm9014_vm1, %v9013_v2 }
 0x359   :  { %8831 = vmatpush3.msra.mxu0 %v6206_v31  ;;  %8838 = vmatpush3.msra.mxu1 %v6208_v48 }
 0x35a   :  { %8839 = vmatprep.mubr.msk.f32.mxu1 %vm9014_vm1, %v9013_v2  ;;  %8842 = vmatprep.subr.mxu0 %v9013_v2 }
 0x35b   :  { %8849 = vmatprep.subr.mxu1 %v9013_v2 }
 0x35c   :  { %v5574_v18 = vpop.f32.mrf.mxu1  ;;  %v8986_v8 = vpop.eup %8985 }
 0x35d   :  { %v5501_v47 = vpop.f32.mrf.mxu0  ;;  %v6185_v22 = vmul.f32 %v8970_v13, %v5574_v18  ;;  %v8988_v10 = vpop.eup %8987  ;;  %v7411_v13 = vld [vmem:[%s10626_s7 + $0x8] sm:$0xff]  ;;  %v7410_v18 = vld [vmem:[%s10626_s7] sm:$0xff] }
 0x35e   :  { %v6184_v55 = vmul.f32 %v8972_v21, %v5501_v47  ;;  %v8745_v35 = vpop.f32.mrf.mxu1 }
 0x35f   :  { %v8740_v25 = vpop.f32.mrf.mxu0  ;;  %8840 = vmatmul.mubr.msk.f32.vlgmr.msra.gmra.mxu1 %vm3616_vm2, %v6185_v22 }
 0x360   :  { %8833 = vmatmul.mubr.msk.f32.vlgmr.msra.gmra.mxu0 %vm3616_vm2, %v6184_v55  ;;  %8850 = vmatpush3.msra.mxu1 %v6213_v36 }
 0x361   :  { %8843 = vmatpush3.msra.mxu0 %v6211_v57  ;;  %8851 = vmatprep.subr.mxu1 %v9013_v2 }
 0x362   :  { %8844 = vmatprep.subr.mxu0 %v9013_v2  ;;  %8846 = vmatprep.mubr.msk.f32.mxu0 %vm9014_vm1, %v9013_v2 }
 0x363   :  { %8845 = vmatpush3.msra.mxu0 %v6210_v40  ;;  %8852 = vmatpush3.msra.mxu1 %v6212_v39 }
 0x364   :  { %8853 = vmatprep.mubr.msk.f32.mxu1 %vm9014_vm1, %v9013_v2  ;;  %8856 = vmatprep.subr.mxu0 %v9013_v2 }
 0x365   :  { %8863 = vmatprep.subr.mxu1 %v9013_v2 }
 0x366   :  { %v5720_v26 = vpop.f32.mrf.mxu1 }
 0x367   :  { %v5647_v34 = vpop.f32.mrf.mxu0  ;;  %v6187_v15 = vmul.f32 %v8974_v56, %v5720_v26 }
 0x368   :  { %v6186_v62 = vmul.f32 %v8976_v29, %v5647_v34  ;;  %v8755_v37 = vpop.f32.mrf.mxu1 }
 0x369   :  { %v8750_v38 = vpop.f32.mrf.mxu0  ;;  %8854 = vmatmul.mubr.msk.f32.vlgmr.msra.gmra.mxu1 %vm3616_vm2, %v6187_v15 }
 0x36a   :  { %8847 = vmatmul.mubr.msk.f32.vlgmr.msra.gmra.mxu0 %vm3616_vm2, %v6186_v62  ;;  %8864 = vmatpush3.msra.mxu1 %v6217_v61 }
 0x36b   :  { %8857 = vmatpush3.msra.mxu0 %v6215_v16  ;;  %8865 = vmatprep.subr.mxu1 %v9013_v2 }
 0x36c   :  { %8858 = vmatprep.subr.mxu0 %v9013_v2  ;;  %8860 = vmatprep.mubr.msk.f32.mxu0 %vm9014_vm1, %v9013_v2 }
 0x36d   :  { %8859 = vmatpush3.msra.mxu0 %v6214_v43  ;;  %8866 = vmatpush3.msra.mxu1 %v6216_v44  ;;  %v8989_v43 = vld [vmem:[%s10619_s0] sm:$0xff] }
 0x36e   :  { %8867 = vmatprep.mubr.msk.f32.mxu1 %vm9014_vm1, %v9013_v2  ;;  %8870 = vmatprep.subr.mxu0 %v9013_v2 }
 0x36f   :  { %8877 = vmatprep.subr.mxu1 %v9013_v2 }
 0x370   :  { %v5866_v6 = vpop.f32.mrf.mxu1 }
 0x371   :  { %v5793_v51 = vpop.f32.mrf.mxu0  ;;  %v6189_v42 = vmul.f32 %v8978_v19, %v5866_v6 }
 0x372   :  { %v6188_v45 = vmul.f32 %v8980_v7, %v5793_v51  ;;  %v8765_v52 = vpop.f32.mrf.mxu1 }
 0x373   :  { %v8760_v58 = vpop.f32.mrf.mxu0  ;;  %8868 = vmatmul.mubr.msk.f32.vlgmr.msra.gmra.mxu1 %vm3616_vm2, %v6189_v42 }
 0x374   :  { %8861 = vmatmul.mubr.msk.f32.vlgmr.msra.gmra.mxu0 %vm3616_vm2, %v6188_v45  ;;  %8878 = vmatpush3.msra.mxu1 %v6221_v20 }
 0x375   :  { %8871 = vmatpush3.msra.mxu0 %v6219_v54  ;;  %8879 = vmatprep.subr.mxu1 %v9013_v2 }
 0x376   :  { %8872 = vmatprep.subr.mxu0 %v9013_v2  ;;  %8874 = vmatprep.mubr.msk.f32.mxu0 %vm9014_vm1, %v9013_v2 }
 0x377   :  { %8873 = vmatpush3.msra.mxu0 %v6218_v14  ;;  %8880 = vmatpush3.msra.mxu1 %v6220_v23 }
 0x378   :  { %8881 = vmatprep.mubr.msk.f32.mxu1 %vm9014_vm1, %v9013_v2  ;;  %8884 = vmatprep.subr.mxu0 %v9013_v2 }
 0x379   :  { %8891 = vmatprep.subr.mxu1 %v9013_v2 }
 0x37a   :  { %v6012_v60 = vpop.f32.mrf.mxu1 }
 0x37b   :  { %v5939_v0 = vpop.f32.mrf.mxu0  ;;  %v6191_v1 = vmul.f32 %v8982_v59, %v6012_v60 }
 0x37c   :  { %v6190_v28 = vmul.f32 %v8984_v63, %v5939_v0  ;;  %v8775_v30 = vpop.f32.mrf.mxu1 }
 0x37d   :  { %v8770_v33 = vpop.f32.mrf.mxu0  ;;  %8882 = vmatmul.mubr.msk.f32.vlgmr.msra.gmra.mxu1 %vm3616_vm2, %v6191_v1 }
 0x37e   :  { %8875 = vmatmul.mubr.msk.f32.vlgmr.msra.gmra.mxu0 %vm3616_vm2, %v6190_v28  ;;  %8892 = vmatpush3.msra.mxu1 %v6225_v3 }
 0x37f   :  { %8885 = vmatpush3.msra.mxu0 %v6223_v27  ;;  %8893 = vmatprep.subr.mxu1 %v9013_v2  ;;  %v8990_v27 = vld [vmem:[%s10619_s0 + $0x8] sm:$0xff] }
 0x380   :  { %8886 = vmatprep.subr.mxu0 %v9013_v2  ;;  %8888 = vmatprep.mubr.msk.f32.mxu0 %vm9014_vm1, %v9013_v2 }
 0x381   :  { %8887 = vmatpush3.msra.mxu0 %v6222_v4  ;;  %8894 = vmatpush3.msra.mxu1 %v6224_v5  ;;  %v7507_v4 = vld [vmem:[%s10628_s9 + $0x18] sm:$0xff]  ;;  %v7506_v5 = vld [vmem:[%s10628_s9 + $0x10] sm:$0xff] }
 0x382   :  { %8895 = vmatprep.mubr.msk.f32.mxu1 %vm9014_vm1, %v9013_v2  ;;  %8898 = vmatprep.subr.mxu0 %v7413_v12  ;;  %v7412_v2 = vld [vmem:[%s10626_s7 + $0x10] sm:$0xff] }
 0x383   :  { %8909 = vmatprep.subr.mxu1 %v7507_v4 }
 0x384   :  { %v6158_v9 = vpop.f32.mrf.mxu1 }
 0x385   :  { %v6085_v11 = vpop.f32.mrf.mxu0  ;;  %v6193_v32 = vmul.f32 %v8986_v8, %v6158_v9  ;;  %v7505_v8 = vld [vmem:[%s10628_s9 + $0x8] sm:$0xff]  ;;  %v7504_v9 = vld [vmem:[%s10628_s9] sm:$0xff]  ;;  %s9015_s9 = smov [#allocation2]  }
 0x386   :  { %v6192_v46 = vmul.f32 %v8988_v10, %v6085_v11  ;;  %v8785_v31 = vpop.f32.mrf.mxu1  ;;  %v7728_v10 = vld [vmem:[%s10627_s8] ss:$0 sm:$0xff]  ;;  %s7605_s13 = sshll.u32 %s9015_s9, 4  ;;  %s7606_s13 = int_to_ptr.vmem [resolvable:$true] %s7605_s13 }
 0x387   :  { %v8780_v48 = vpop.f32.mrf.mxu0  ;;  %8896 = vmatmul.mubr.msk.f32.vlgmr.msra.gmra.mxu1 %vm3616_vm2, %v6193_v32  ;;  %s8991_s8 = scalar_lea.vmem %s7606_s13, 256  ;;  %p8996_p1 = scmp.lt.s32.totalorder %s7606_s13, %s7606_s13 }
 0x388   :  { %8889 = vmatmul.mubr.msk.f32.vlgmr.msra.gmra.mxu0 %vm3616_vm2, %v6192_v46  ;;  %8910 = vmatpush3.msra.mxu1 %v7507_v4  ;;  %p8992_p0 = scmp.ne.s32.totalorder %s7606_s13, %s8991_s8  ;;  %p8997_p2 = scmp.lt.s32.totalorder %s8991_s8, %s8991_s8 }
 0x389   :  { %8899 = vmatpush3.msra.mxu0 %v7413_v12  ;;  %8911 = vmatprep.subr.mxu1 %v7506_v5 }
 0x38a   :  { %8900 = vmatprep.subr.mxu0 %v7412_v2  ;;  %8912 = vmatpush3.msra.mxu1 %v7506_v5  ;;  %p8998_p3 = por %p8997_p2, %p8996_p1 }
 0x38b   :  { %8901 = vmatpush3.msra.mxu0 %v7412_v2  ;;  %8913 = vmatprep.subr.mxu1 %v7505_v8  ;;  %v7731_v2 = vld [vmem:[%s10629_s10] ss:$0 sm:$0xff] }
 0x38c   :  { %8902 = vmatprep.subr.mxu0 %v7411_v13  ;;  %8914 = vmatpush3.msra.mxu1 %v7505_v8  ;;  %p8999_p4 = pnand %p8998_p3, %p8992_p0 }
 0x38d   :  { %8903 = vmatpush3.msra.mxu0 %v7411_v13  ;;  %8915 = vmatprep.subr.mxu1 %v7504_v9 }
 0x38e   :  { %8904 = vmatprep.subr.mxu0 %v7410_v18  ;;  %8916 = vmatpush3.msra.mxu1 %v7504_v9 }
 0x38f   :  { %8905 = vmatpush3.msra.mxu0 %v7410_v18 }
 0x401   :  { %v6295_v21 = vpop.f32.mrf.mxu0 }
 0x403   :  { %v8792_v47 = vpop.f32.mrf.mxu0 }
 0x405   :  { %v6368_v22 = vpop.f32.mrf.mxu1 }
 0x406   :  { %v7394_v50 = vadd.f32 %v6368_v22, %v6295_v21 }
 0x407   :  { %v8799_v36 = vpop.f32.mrf.mxu1 }
 0x40b   :  { %v6441_v55 = vpop.f32.mrf.mxu0 }
 0x40c   :  { %v7396_v53 = vadd.f32 %v7394_v50, %v6441_v55 }
 0x40d   :  { %v8806_v35 = vpop.f32.mrf.mxu0 }
 0x40f   :  { %v6514_v57 = vpop.f32.mrf.mxu1 }
 0x410   :  { %v7398_v29 = vadd.f32 %v7396_v53, %v6514_v57 }
 0x411   :  { %v8813_v25 = vpop.f32.mrf.mxu1 }
 0x415   :  { %v6660_v40 = vpop.f32.mrf.mxu1 }
 0x416   :  { %v6587_v39 = vpop.f32.mrf.mxu0 }
 0x417   :  { %v8827_v56 = vpop.f32.mrf.mxu1  ;;  %v7400_v34 = vadd.f32 %v7398_v29, %v6587_v39 }
 0x418   :  { %v8820_v26 = vpop.f32.mrf.mxu0 }
 0x419   :  { %v7402_v15 = vadd.f32 %v7400_v34, %v6660_v40 }
 0x41f   :  { %v6806_v61 = vpop.f32.mrf.mxu1 }
 0x420   :  { %v6733_v62 = vpop.f32.mrf.mxu0 }
 0x421   :  { %v7404_v37 = vadd.f32 %v7402_v15, %v6733_v62  ;;  %v8841_v16 = vpop.f32.mrf.mxu1 }
 0x422   :  { %v8834_v38 = vpop.f32.mrf.mxu0 }
 0x423   :  { %v7406_v41 = vadd.f32 %v7404_v37, %v6806_v61 }
 0x425   :  { %v7408_v44 = vadd.f32 %v8989_v43, %v7406_v41 }
 0x427   :  { %8906 = vmatprep.mubr.msk.f32.mxu0 %vm109_vm0, %v7408_v44 }
 0x429   :  { %v6952_v49 = vpop.f32.mrf.mxu1 }
 0x42a   :  { %v6879_v19 = vpop.f32.mrf.mxu0 }
 0x42b   :  { %v8855_v6 = vpop.f32.mrf.mxu1  ;;  %v7395_v52 = vadd.f32 %v6952_v49, %v6879_v19 }
 0x42c   :  { %v8848_v7 = vpop.f32.mrf.mxu0 }
 0x433   :  { %v7098_v51 = vpop.f32.mrf.mxu1 }
 0x434   :  { %v7025_v42 = vpop.f32.mrf.mxu0 }
 0x435   :  { %v8869_v20 = vpop.f32.mrf.mxu1  ;;  %v7397_v54 = vadd.f32 %v7395_v52, %v7025_v42 }
 0x436   :  { %v8862_v45 = vpop.f32.mrf.mxu0 }
 0x437   :  { %v7399_v17 = vadd.f32 %v7397_v54, %v7098_v51 }
 0x43d   :  { %v7244_v58 = vpop.f32.mrf.mxu1 }
 0x43e   :  { %v7171_v24 = vpop.f32.mrf.mxu0 }
 0x43f   :  { %v8883_v14 = vpop.f32.mrf.mxu1  ;;  %v7401_v59 = vadd.f32 %v7399_v17, %v7171_v24 }
 0x440   :  { %v8876_v23 = vpop.f32.mrf.mxu0 }
 0x441   :  { %v7403_v60 = vadd.f32 %v7401_v59, %v7244_v58 }
 0x447   :  { %v7390_v63 = vpop.f32.mrf.mxu1 }
 0x448   :  { %v7317_v0 = vpop.f32.mrf.mxu0 }
 0x449   :  { %v7405_v1 = vadd.f32 %v7403_v60, %v7317_v0  ;;  %v8897_v3 = vpop.f32.mrf.mxu1 }
 0x44a   :  { %v8890_v28 = vpop.f32.mrf.mxu0 }
 0x44b   :  { %v7407_v30 = vadd.f32 %v7405_v1, %v7390_v63 }
 0x44d   :  { %v7409_v33 = vadd.f32 %v8990_v27, %v7407_v30 }
 0x44f   :  { %8907 = vmatmul.mubr.msk.f32.vlgmr.msra.gmra.mxu0 %vm109_vm0, %v7409_v33 }
 0x50f   :  { %v8908_v11 = vpop.f32.mrf.mxu0 }
 0x510   :  { %v7499_v32 = vadd.f32 %v8908_v11, %v7728_v10 }
 0x511   :  { %v7493_v46 = vpop.f32.mrf.mxu0 }
 0x512   :  { %v7494_v31 = vadd.f32 %v7728_v10, %v7493_v46  ;;  %v7503_v12 = vmax.f32 %v7499_v32, 0.0 }
 0x514   :  { %v7502_v48 = vmax.f32 %v7494_v31, 0.0 }
 0x516   :  { %8917 = vmatprep.mubr.msk.f32.mxu1 %vm109_vm0, %v7502_v48 }
 0x517   :  { %8918 = vmatmul.mubr.msk.f32.vlgmr.msra.gmra.mxu1 %vm109_vm0, %v7503_v12 }
 0x5d7   :  { %v8919_v13 = vpop.f32.mrf.mxu1 }
 0x5d8   :  { %v7593_v18 = vadd.f32 %v8919_v13, %v7731_v2 }
 0x5d9   :  { %v7587_v21 = vpop.f32.mrf.mxu1 }
 0x5da   :  { %v7597_v47 = vadd.f32 %v7593_v18, %v7409_v33  ;;  %v7588_v22 = vadd.f32 %v7731_v2, %v7587_v21 }
 0x5dc   :  { %7599 = vst.msk [vmem:[#allocation2 + $0x8] sm:$0xff] %vm109_vm0, %v7597_v47  ;;  %v7596_v36 = vadd.f32 %v7588_v22, %v7408_v44 }
 0x5de   :  { %7598 = vst.msk [vmem:[#allocation2] sm:$0xff] %vm109_vm0, %v7596_v36 }
 0x5df   :  { %9002 = shalt.err (!%p8999_p4)
}
 0x5e0   :  { %s9016_s10 = smov 128   ;;  %s9017_s14 = smov 8  }
 0x5e1   :  { %7611 = dma.vmem_to_hbm [thread:$0]  %s7606_s13, 256, %s10630_s11, [#allocation3], %s9016_s10, %s9016_s10, %s9017_s14  }
 0x5e2   :  { %9011 = dma.done.wait [#allocation3], 256  }
 0x5e3   :  { %9012 = vsyncadd [#allocation3], 4294967040 }
 0x5e4   :  { %7615 = vsyncpa [#allocation3], 1 }

</bundles_post_ra>
